<compile_context>
chip_gen: v7x
topology: tpu7x:2x2x1
jax: 0.10.0
libtpu: 0.0.40
codegen_flags: <defaults>
</compile_context>

<pallas_src>
import functools

import jax
import jax.numpy as jnp
from jax import lax
from jax.experimental import pallas as pl
from jax.experimental.pallas import tpu as pltpu


_NEG_INF = -1e30


def _simclr_kernel(zr_ref, zc_ref, zp_ref, out_ref,
                   zrow_ref, pos_ref, m_ref, l_ref,
                   *, inv_temp, tile_rows, tile_cols, eps_sq, matmul_dtype):
    r = pl.program_id(0)          # row-block index     ("parallel")
    c = pl.program_id(1)          # column-block index  ("arbitrary" reduction)
    last_c = pl.num_programs(1) - 1

    # ---- once per row block: normalize rows, cache the scaled operand, positives.
    @pl.when(c == 0)
    def _init():
        zr = zr_ref[...].astype(jnp.float32)
        inv_nr = lax.rsqrt(jnp.maximum(jnp.sum(zr * zr, axis=-1, keepdims=True), eps_sq))
        zr_n = zr * inv_nr                                          # unit rows, f32
        zrow_ref[...] = (zr_n * inv_temp).astype(zrow_ref.dtype)    # fold 1/T here

        # Positive logit: cosine(z[a], z[(a+B) mod N]) / T.  The partner tile is
        # the row tile shifted by B, so positives align on the local row index.
        zp = zp_ref[...].astype(jnp.float32)
        inv_np = lax.rsqrt(jnp.maximum(jnp.sum(zp * zp, axis=-1, keepdims=True), eps_sq))
        pos_ref[...] = jnp.sum(zr_n * (zp * inv_np), axis=-1, keepdims=True) * inv_temp

        m_ref[...] = jnp.full_like(m_ref, -jnp.inf)
        l_ref[...] = jnp.zeros_like(l_ref)

    # ---- streamed column tile: normalize, then one Gram matmul on the MXU.
    zc = zc_ref[...].astype(jnp.float32)
    inv_nc = lax.rsqrt(jnp.maximum(jnp.sum(zc * zc, axis=-1, keepdims=True), eps_sq))
    zc_n = (zc * inv_nc).astype(matmul_dtype)

    s = lax.dot_general(                        # (tile_rows, tile_cols), f32 accum
        zrow_ref[...], zc_n, (((1,), (1,)), ((), ())),
        preferred_element_type=jnp.float32)

    # ---- exclude self-similarity: register-level compare vs. a scalar diagonal
    # offset (no VMEM scratch round-trip, no branch).
    lane_minus_sub = (lax.broadcasted_iota(jnp.int32, (tile_rows, tile_cols), 1)
                      - lax.broadcasted_iota(jnp.int32, (tile_rows, tile_cols), 0))
    diag_off = r * tile_rows - c * tile_cols
    s = jnp.where(lane_minus_sub == diag_off, jnp.float32(_NEG_INF), s)

    # ---- online logsumexp over all non-diagonal logits of this row block.
    m_prev = m_ref[...]
    m_new = jnp.maximum(m_prev, jnp.max(s, axis=-1, keepdims=True))
    p = jnp.exp(s - m_new)
    l_ref[...] = jnp.exp(m_prev - m_new) * l_ref[...] + jnp.sum(p, axis=-1, keepdims=True)
    m_ref[...] = m_new

    # ---- per-row loss = logsumexp - positive, written once per row block.
    @pl.when(c == last_c)
    def _finalize():
        out_ref[...] = m_ref[...] + jnp.log(l_ref[...]) - pos_ref[...]


def _pick_tile(n, candidates=(256, 128, 64, 32, 16, 8)):
    for t in candidates:
        if n % t == 0:
            return t
    return n


def simclr_loss(z_i, z_j, temperature=0.5, *, matmul_dtype=None,
                tile_rows=None, tile_cols=None):
    """SimCLR loss (sum cross-entropy / N), matching the PyTorch module."""
    assert z_i.ndim == 2 and z_i.shape == z_j.shape
    B, D = z_i.shape
    N = 2 * B
    if B % 8 != 0:
        # TODO(synk): pad the row dimension for batch sizes that are not multiples of 8.
        raise ValueError("batch_size must be a multiple of 8 for TPU tiling")
    if matmul_dtype is None:
        matmul_dtype = jnp.float32      # exact; pass jnp.bfloat16 for v6e/v7x MXU speed

    tile_rows = tile_rows or _pick_tile(B)
    tile_cols = tile_cols or _pick_tile(N)
    assert B % tile_rows == 0, "tile_rows must divide batch_size"
    assert N % tile_cols == 0, "tile_cols must divide 2*batch_size"

    num_r = N // tile_rows
    num_c = N // tile_cols
    half_blocks = B // tile_rows        # block offset of the positive partner rows

    # One cheap XLA concat outside the kernel; avoids an in-kernel (N, D) copy.
    z = jnp.concatenate([z_i, z_j], axis=0)

    kernel = functools.partial(
        _simclr_kernel,
        inv_temp=1.0 / float(temperature),
        tile_rows=tile_rows, tile_cols=tile_cols,
        eps_sq=1e-16,                   # == (PyTorch CosineSimilarity eps)^2, per-row clamp
        matmul_dtype=matmul_dtype)

    itemsize = jnp.dtype(z.dtype).itemsize
    cost = pl.CostEstimate(
        flops=2 * N * N * D + 6 * N * D,            # Gram matmul + normalization/positives
        transcendentals=N * N + 3 * N,              # exp per logit + rsqrt/log per row
        bytes_accessed=N * D * itemsize * (1 + num_r) + N * 4)

    per_row_loss = pl.pallas_call(
        kernel,
        out_shape=jax.ShapeDtypeStruct((N, 1), jnp.float32),
        grid_spec=pltpu.PrefetchScalarGridSpec(
            num_scalar_prefetch=0,
            grid=(num_r, num_c),                      # reduction (columns) innermost
            in_specs=[
                # row tile of z (index constant over c -> fetched once per row block)
                pl.BlockSpec((tile_rows, D), lambda r, c: (r, 0)),
                # streamed column tile of z
                pl.BlockSpec((tile_cols, D), lambda r, c: (c, 0)),
                # partner tile (rows shifted by B) for the positive pairs
                pl.BlockSpec((tile_rows, D),
                             lambda r, c: ((r + half_blocks) % num_r, 0)),
            ],
            out_specs=pl.BlockSpec((tile_rows, 1), lambda r, c: (r, 0)),
            scratch_shapes=[
                pltpu.VMEM((tile_rows, D), matmul_dtype),   # normalized, 1/T-scaled rows
                pltpu.VMEM((tile_rows, 1), jnp.float32),    # positive logits
                pltpu.VMEM((tile_rows, 1), jnp.float32),    # running max
                pltpu.VMEM((tile_rows, 1), jnp.float32),    # running sum-exp
            ]),
        compiler_params=pltpu.CompilerParams(
            dimension_semantics=("parallel", "arbitrary"),
            vmem_limit_bytes=32 * 1024 * 1024),
        cost_estimate=cost,
    )(z, z, z)

    # Tiny final reduction (N scalars): sum-reduced cross entropy / N.
    return jnp.sum(per_row_loss) / jnp.float32(N)


def _simclr_loss_ref(z_i, z_j, temperature=0.5):
    """Pure-JAX reference mirroring the PyTorch forward (for sanity checking)."""
    B = z_i.shape[0]
    N = 2 * B
    z = jnp.concatenate([z_i, z_j], axis=0).astype(jnp.float32)
    dot = jnp.matmul(z, z.T, precision=lax.Precision.HIGHEST)
    norms = jnp.linalg.norm(z, axis=-1)
    sim = dot / jnp.maximum(norms[:, None] * norms[None, :], 1e-8) / temperature
    idx = jnp.arange(N)
    pos = sim[idx, (idx + B) % N]
    masked = jnp.where(jnp.eye(N, dtype=bool), -jnp.inf, sim)
    lse = jax.scipy.special.logsumexp(masked, axis=-1)
    return jnp.sum(lse - pos) / N


if __name__ == "__main__":
    batch_size, dim = 128, 64          # N = 256 rows of the similarity matrix
    key = jax.random.PRNGKey(0)
    k1, k2 = jax.random.split(key)
    z_i = jax.random.normal(k1, (batch_size, dim), dtype=jnp.float32)
    z_j = jax.random.normal(k2, (batch_size, dim), dtype=jnp.float32)

    ref = _simclr_loss_ref(z_i, z_j, temperature=0.5)

    # float32 MXU path; 128x128 tiles -> a 2 x 2 (row-block x col-block) grid.
    loss_f32 = simclr_loss(z_i, z_j, temperature=0.5,
                           matmul_dtype=jnp.float32, tile_rows=128, tile_cols=128)
    jax.block_until_ready(loss_f32)
    assert jnp.allclose(loss_f32, ref, rtol=1e-4, atol=1e-4), (loss_f32, ref)

    # bfloat16 MXU-operand path (v6e/v7x throughput); softmax math stays f32.
    loss_bf16 = simclr_loss(z_i, z_j, temperature=0.5, matmul_dtype=jnp.bfloat16)
    jax.block_until_ready(loss_bf16)
    assert jnp.allclose(loss_bf16, ref, rtol=3e-2, atol=5e-2), (loss_bf16, ref)

    print("KERNEL_OK")
</pallas_src>

<mosaic_0001>
module attributes {stable_mosaic.version = 11 : i64} {
  func.func @_simclr_kernel(%arg0: i32, %arg1: i32, %arg2: memref<128x64xf32, #tpu.memory_space<vmem>>, %arg3: memref<128x64xf32, #tpu.memory_space<vmem>>, %arg4: memref<128x64xf32, #tpu.memory_space<vmem>>, %arg5: memref<128x1xf32, #tpu.memory_space<vmem>>, %arg6: memref<128x64xf32, #tpu.memory_space<vmem>>, %arg7: memref<128x1xf32, #tpu.memory_space<vmem>>, %arg8: memref<128x1xf32, #tpu.memory_space<vmem>>, %arg9: memref<128x1xf32, #tpu.memory_space<vmem>>) attributes {dimension_semantics = [#tpu.dimension_semantics<parallel>, #tpu.dimension_semantics<arbitrary>], iteration_bounds = array<i64: 2, 2>, scalar_prefetch = 0 : i64, scratch_operands = 4 : i64, tpu.core_type = #tpu.core_type<tc>, window_params = [{transform_indices = @transform_0, window_bounds = array<i64: 128, 64>}, {transform_indices = @transform_1, window_bounds = array<i64: 128, 64>}, {transform_indices = @transform_2, window_bounds = array<i64: 128, 64>}, {transform_indices = @transform_3, window_bounds = array<i64: 128, 1>}]} {
    %c0_i32 = arith.constant 0 : i32
    %0 = arith.cmpi eq, %arg1, %c0_i32 : i32
    %1 = arith.extui %0 : i1 to i32
    %c0_i32_0 = arith.constant 0 : i32
    %2 = arith.cmpi ne, %1, %c0_i32_0 : i32
    scf.if %2 {
      %c0_19 = arith.constant 0 : index
      %c0_20 = arith.constant 0 : index
      %43 = vector.load %arg2[%c0_19, %c0_20] : memref<128x64xf32, #tpu.memory_space<vmem>>, vector<128x64xf32>
      %44 = arith.mulf %43, %43 : vector<128x64xf32>
      %cst_21 = arith.constant dense<0.000000e+00> : vector<128xf32>
      %45 = vector.multi_reduction <add>, %44, %cst_21 [1] : vector<128x64xf32> to vector<128xf32>
      %46 = vector.shape_cast %45 : vector<128xf32> to vector<128x1xf32>
      %cst_22 = arith.constant 1.000000e-16 : f32
      %47 = vector.broadcast %cst_22 : f32 to vector<128x1xf32>
      %48 = arith.maximumf %46, %47 : vector<128x1xf32>
      %49 = math.rsqrt %48 : vector<128x1xf32>
      %50 = vector.broadcast %49 : vector<128x1xf32> to vector<128x64xf32>
      %51 = arith.mulf %43, %50 : vector<128x64xf32>
      %cst_23 = arith.constant 2.000000e+00 : f32
      %52 = vector.broadcast %cst_23 : f32 to vector<128x64xf32>
      %53 = arith.mulf %51, %52 : vector<128x64xf32>
      %c0_24 = arith.constant 0 : index
      %c0_25 = arith.constant 0 : index
      %54 = vector.load %arg6[%c0_24, %c0_25] : memref<128x64xf32, #tpu.memory_space<vmem>>, vector<128x64xf32>
      tpu.vector_store %arg6[%c0_24, %c0_25], %53 {strides = array<i32>} : memref<128x64xf32, #tpu.memory_space<vmem>>, vector<128x64xf32>,
      %c0_26 = arith.constant 0 : index
      %c0_27 = arith.constant 0 : index
      %55 = vector.load %arg4[%c0_26, %c0_27] : memref<128x64xf32, #tpu.memory_space<vmem>>, vector<128x64xf32>
      %56 = arith.mulf %55, %55 : vector<128x64xf32>
      %cst_28 = arith.constant dense<0.000000e+00> : vector<128xf32>
      %57 = vector.multi_reduction <add>, %56, %cst_28 [1] : vector<128x64xf32> to vector<128xf32>
      %58 = vector.shape_cast %57 : vector<128xf32> to vector<128x1xf32>
      %cst_29 = arith.constant 1.000000e-16 : f32
      %59 = vector.broadcast %cst_29 : f32 to vector<128x1xf32>
      %60 = arith.maximumf %58, %59 : vector<128x1xf32>
      %61 = math.rsqrt %60 : vector<128x1xf32>
      %62 = vector.broadcast %61 : vector<128x1xf32> to vector<128x64xf32>
      %63 = arith.mulf %55, %62 : vector<128x64xf32>
      %64 = arith.mulf %51, %63 : vector<128x64xf32>
      %cst_30 = arith.constant dense<0.000000e+00> : vector<128xf32>
      %65 = vector.multi_reduction <add>, %64, %cst_30 [1] : vector<128x64xf32> to vector<128xf32>
      %66 = vector.shape_cast %65 : vector<128xf32> to vector<128x1xf32>
      %cst_31 = arith.constant 2.000000e+00 : f32
      %67 = vector.broadcast %cst_31 : f32 to vector<128x1xf32>
      %68 = arith.mulf %66, %67 : vector<128x1xf32>
      %c0_32 = arith.constant 0 : index
      %c0_33 = arith.constant 0 : index
      %69 = vector.load %arg7[%c0_32, %c0_33] : memref<128x1xf32, #tpu.memory_space<vmem>>, vector<128x1xf32>
      tpu.vector_store %arg7[%c0_32, %c0_33], %68 {strides = array<i32>} : memref<128x1xf32, #tpu.memory_space<vmem>>, vector<128x1xf32>,
      %cst_34 = arith.constant 0xFF800000 : f32
      %70 = vector.broadcast %cst_34 : f32 to vector<128x1xf32>
      %c0_35 = arith.constant 0 : index
      %c0_36 = arith.constant 0 : index
      %71 = vector.load %arg8[%c0_35, %c0_36] : memref<128x1xf32, #tpu.memory_space<vmem>>, vector<128x1xf32>
      tpu.vector_store %arg8[%c0_35, %c0_36], %70 {strides = array<i32>} : memref<128x1xf32, #tpu.memory_space<vmem>>, vector<128x1xf32>,
      %cst_37 = arith.constant 0.000000e+00 : f32
      %72 = vector.broadcast %cst_37 : f32 to vector<128x1xf32>
      %c0_38 = arith.constant 0 : index
      %c0_39 = arith.constant 0 : index
      %73 = vector.load %arg9[%c0_38, %c0_39] : memref<128x1xf32, #tpu.memory_space<vmem>>, vector<128x1xf32>
      tpu.vector_store %arg9[%c0_38, %c0_39], %72 {strides = array<i32>} : memref<128x1xf32, #tpu.memory_space<vmem>>, vector<128x1xf32>,
    } else {
    }
    %c0 = arith.constant 0 : index
    %c0_1 = arith.constant 0 : index
    %3 = vector.load %arg3[%c0, %c0_1] : memref<128x64xf32, #tpu.memory_space<vmem>>, vector<128x64xf32>
    %4 = arith.mulf %3, %3 : vector<128x64xf32>
    %cst = arith.constant dense<0.000000e+00> : vector<128xf32>
    %5 = vector.multi_reduction <add>, %4, %cst [1] : vector<128x64xf32> to vector<128xf32>
    %6 = vector.shape_cast %5 : vector<128xf32> to vector<128x1xf32>
    %cst_2 = arith.constant 1.000000e-16 : f32
    %7 = vector.broadcast %cst_2 : f32 to vector<128x1xf32>
    %8 = arith.maximumf %6, %7 : vector<128x1xf32>
    %9 = math.rsqrt %8 : vector<128x1xf32>
    %10 = vector.broadcast %9 : vector<128x1xf32> to vector<128x64xf32>
    %11 = arith.mulf %3, %10 : vector<128x64xf32>
    %c0_3 = arith.constant 0 : index
    %c0_4 = arith.constant 0 : index
    %12 = vector.load %arg6[%c0_3, %c0_4] : memref<128x64xf32, #tpu.memory_space<vmem>>, vector<128x64xf32>
    %cst_5 = arith.constant dense<0.000000e+00> : vector<128x128xf32>
    %13 = tpu.matmul %12, %11, %cst_5 {dimension_numbers = #tpu.dot_dimension_numbers<[1], [1], [0], [0], [0, 0, 1, 0], [], []>} : vector<128x64xf32>, vector<128x64xf32>, vector<128x128xf32> -> vector<128x128xf32>
    %14 = tpu.iota {dimensions = array<i32: 1>} : vector<128x128xi32>
    %15 = tpu.iota {dimensions = array<i32: 0>} : vector<128x128xi32>
    %16 = arith.subi %14, %15 : vector<128x128xi32>
    %c128_i32 = arith.constant 128 : i32
    %17 = arith.muli %arg0, %c128_i32 : i32
    %c128_i32_6 = arith.constant 128 : i32
    %18 = arith.muli %arg1, %c128_i32_6 : i32
    %19 = arith.subi %17, %18 : i32
    %20 = vector.broadcast %19 : i32 to vector<128x128xi32>
    %21 = arith.cmpi eq, %16, %20 : vector<128x128xi32>
    %cst_7 = arith.constant -1.000000e+30 : f32
    %22 = vector.broadcast %cst_7 : f32 to vector<128x128xf32>
    %23 = arith.select %21, %22, %13 : vector<128x128xi1>, vector<128x128xf32>
    %c0_8 = arith.constant 0 : index
    %c0_9 = arith.constant 0 : index
    %24 = vector.load %arg8[%c0_8, %c0_9] : memref<128x1xf32, #tpu.memory_space<vmem>>, vector<128x1xf32>
    %cst_10 = arith.constant dense<0xFF800000> : vector<128xf32>
    %25 = vector.multi_reduction <maximumf>, %23, %cst_10 [1] : vector<128x128xf32> to vector<128xf32>
    %26 = vector.shape_cast %25 : vector<128xf32> to vector<128x1xf32>
    %27 = arith.maximumf %24, %26 : vector<128x1xf32>
    %28 = vector.broadcast %27 : vector<128x1xf32> to vector<128x128xf32>
    %29 = arith.subf %23, %28 : vector<128x128xf32>
    %30 = math.exp %29 : vector<128x128xf32>
    %31 = arith.subf %24, %27 : vector<128x1xf32>
    %32 = math.exp %31 : vector<128x1xf32>
    %c0_11 = arith.constant 0 : index
    %c0_12 = arith.constant 0 : index
    %33 = vector.load %arg9[%c0_11, %c0_12] : memref<128x1xf32, #tpu.memory_space<vmem>>, vector<128x1xf32>
    %34 = arith.mulf %32, %33 : vector<128x1xf32>
    %cst_13 = arith.constant dense<0.000000e+00> : vector<128xf32>
    %35 = vector.multi_reduction <add>, %30, %cst_13 [1] : vector<128x128xf32> to vector<128xf32>
    %36 = vector.shape_cast %35 : vector<128xf32> to vector<128x1xf32>
    %37 = arith.addf %34, %36 : vector<128x1xf32>
    %c0_14 = arith.constant 0 : index
    %c0_15 = arith.constant 0 : index
    %38 = vector.load %arg9[%c0_14, %c0_15] : memref<128x1xf32, #tpu.memory_space<vmem>>, vector<128x1xf32>
    tpu.vector_store %arg9[%c0_14, %c0_15], %37 {strides = array<i32>} : memref<128x1xf32, #tpu.memory_space<vmem>>, vector<128x1xf32>,
    %c0_16 = arith.constant 0 : index
    %c0_17 = arith.constant 0 : index
    %39 = vector.load %arg8[%c0_16, %c0_17] : memref<128x1xf32, #tpu.memory_space<vmem>>, vector<128x1xf32>
    tpu.vector_store %arg8[%c0_16, %c0_17], %27 {strides = array<i32>} : memref<128x1xf32, #tpu.memory_space<vmem>>, vector<128x1xf32>,
    %c1_i32 = arith.constant 1 : i32
    %40 = arith.cmpi eq, %arg1, %c1_i32 : i32
    %41 = arith.extui %40 : i1 to i32
    %c0_i32_18 = arith.constant 0 : i32
    %42 = arith.cmpi ne, %41, %c0_i32_18 : i32
    scf.if %42 {
      %c0_19 = arith.constant 0 : index
      %c0_20 = arith.constant 0 : index
      %43 = vector.load %arg8[%c0_19, %c0_20] : memref<128x1xf32, #tpu.memory_space<vmem>>, vector<128x1xf32>
      %c0_21 = arith.constant 0 : index
      %c0_22 = arith.constant 0 : index
      %44 = vector.load %arg9[%c0_21, %c0_22] : memref<128x1xf32, #tpu.memory_space<vmem>>, vector<128x1xf32>
      %45 = math.log %44 : vector<128x1xf32>
      %46 = arith.addf %43, %45 : vector<128x1xf32>
      %c0_23 = arith.constant 0 : index
      %c0_24 = arith.constant 0 : index
      %47 = vector.load %arg7[%c0_23, %c0_24] : memref<128x1xf32, #tpu.memory_space<vmem>>, vector<128x1xf32>
      %48 = arith.subf %46, %47 : vector<128x1xf32>
      %c0_25 = arith.constant 0 : index
      %c0_26 = arith.constant 0 : index
      %49 = vector.load %arg5[%c0_25, %c0_26] : memref<128x1xf32, #tpu.memory_space<vmem>>, vector<128x1xf32>
      tpu.vector_store %arg5[%c0_25, %c0_26], %48 {strides = array<i32>} : memref<128x1xf32, #tpu.memory_space<vmem>>, vector<128x1xf32>,
    } else {
    }
    return
  }
  func.func @transform_0(%arg0: i32, %arg1: i32) -> (i32, i32) {
    %c0_i32 = arith.constant 0 : i32
    %c0_i32_0 = arith.constant 0 : i32
    return %arg0, %c0_i32 : i32, i32
  }
  func.func @transform_1(%arg0: i32, %arg1: i32) -> (i32, i32) {
    %c0_i32 = arith.constant 0 : i32
    %c0_i32_0 = arith.constant 0 : i32
    return %arg1, %c0_i32 : i32, i32
  }
  func.func @transform_2(%arg0: i32, %arg1: i32) -> (i32, i32) {
    %c1_i32 = arith.constant 1 : i32
    %0 = arith.addi %arg0, %c1_i32 : i32
    %c2_i32 = arith.constant 2 : i32
    %c0_i32 = arith.constant 0 : i32
    %1 = arith.cmpi eq, %c2_i32, %c0_i32 : i32
    %c1_i32_0 = arith.constant 1 : i32
    %2 = arith.select %1, %c1_i32_0, %c2_i32 : i32
    %3 = arith.remsi %0, %2 : i32
    %c0_i32_1 = arith.constant 0 : i32
    %4 = arith.cmpi ne, %3, %c0_i32_1 : i32
    %c0_i32_2 = arith.constant 0 : i32
    %5 = arith.cmpi slt, %3, %c0_i32_2 : i32
    %c0_i32_3 = arith.constant 0 : i32
    %6 = arith.cmpi slt, %2, %c0_i32_3 : i32
    %7 = arith.xori %5, %6 : i1
    %8 = arith.andi %7, %4 : i1
    %9 = arith.addi %3, %2 : i32
    %10 = arith.select %8, %9, %3 : i32
    %c0_i32_4 = arith.constant 0 : i32
    %c0_i32_5 = arith.constant 0 : i32
    return %10, %c0_i32_4 : i32, i32
  }
  func.func @transform_3(%arg0: i32, %arg1: i32) -> (i32, i32) {
    %c0_i32 = arith.constant 0 : i32
    %c0_i32_0 = arith.constant 0 : i32
    return %arg0, %c0_i32 : i32, i32
  }
}

</mosaic_0001>

<bundles_post_ra>
// kernel: tpu_custom_call.1
= control target key start
LH: loop header
LB: loop body
LE: loop exit
PB: predicated region body
PF: predicated region fallthrough
CT: control target
= control target key end

     0   :  { %s2289_s12 = smov 0   ;;  %s2291_s13 = smov 0   ;;  %s3305_s0 = inlined_call_operand.vmem [shape: f32[256,64], index: 0, kind: input, shape index: {}]   ;;  %s3306_s1 = inlined_call_operand.vmem [shape: f32[256,64], index: 1, kind: input, shape index: {}]   ;;  %s3307_s2 = inlined_call_operand.vmem [shape: f32[256,64], index: 2, kind: input, shape index: {}]   ;;  %s3308_s3 = inlined_call_operand.vmem [shape: f32[256,1], index: 3, kind: output, shape index: {}]  }
   0x1   :  { %s2293_s14 = smov 0   ;;  %s2295_s15 = smov 0  }
   0x2   :  { %s2297_s16 = smov 0  }
   0x3 LB: > { %s22_s17 = sadd.s32 1, %s2256_s14  ;;  %s25_s18 = sadd.s32 1, %s2260_s15  ;;  %s2264_s16 = sphi %s2297_s16, %s13_s16   ;;  %s2260_s15 = sphi %s2295_s15, %s3328_s15   ;;  %s2256_s14 = sphi %s2293_s14, %s3327_s14   ;;  %s2252_s13 = sphi %s2291_s13, %s3326_s13   ;;  %s2248_s12 = sphi %s2289_s12, %s3325_s12  }
   0x4   : > { %p23_p0 = scmp.ge.s32.totalorder %s22_s17, 2  ;;  %p1787_p1 = scmp.ge.s32.totalorder %s2264_s16, 1 }
   0x5   : > { %p224_p2 = scmp.lt.s32.totalorder %s2264_s16, 5 }
   0x6   : > { %s3330_s17 = smov (%p23_p0, %s22_s17), 0  ;;  %s3332_s18 = smov (!%p23_p0, %s25_s18), %s2260_s15 }
   0x7   : > { %p225_p3 = pnand %p1787_p1, %p224_p2  ;;  %p27_p4 = scmp.ge.s32.totalorder %s3332_s18, 2 }
   0x8   : > { %s1788_s19 = sshll.u32 (!%p225_p3), %s2252_s13, 4  ;;  %s1790_s20 = sshll.u32 (!%p225_p3), %s2248_s12, 4 }
   0x9   : > { %s3334_s18 = smov (%p27_p4, %s3332_s18), 0  ;;  %228 = sbr.rel (%p225_p3) target bundleno = 1337 (0x539), region = 32 }
   0xa   : > { %p272_p5 = scmp.lt.s32.totalorder (!%p225_p3), %s1788_s19, 31  ;;  %p278_p6 = scmp.lt.s32.totalorder (!%p225_p3), %s1790_s20, 31 }
   0xb   : > { %s283_s21 = sadd.s32 (!%p225_p3), 1, %s2252_s13  ;;  %p1799_p10 = scmp.ne.s32.totalorder (!%p225_p3), %s2248_s12, 0 }
   0xc   : > { %p284_p7 = scmp.lt.s32.totalorder (!%p225_p3), %s283_s21, 0  ;;  %s285_s30 = ssub.s32 (!%p225_p3), 0, %s283_s21 }
   0xd   : > { %s1792_s4 = smin.u32 (!%p225_p3), %s285_s30, %s283_s21 }
   0xe   : > { %s287_s8 = sand.u32 (!%p225_p3), 1, %s1792_s4  }
   0xf   : > { %s288_s9 = ssub.s32 (!%p225_p3), 0, %s287_s8 }
  0x10   : > { %s3336_s19 = smov (!%p272_p5, %s1788_s19), 31  ;;  %s3338_s20 = smov (!%p278_p6, %s1790_s20), 31 }
  0x11   : > { %s1789_s22 = sshll.u32 %s3336_s19, 3  ;;  %s1791_s26 = sshll.u32 %s3338_s20, 3  ;;  %vm357_vm0 = vcmask (!%p1799_p10), 523264   ;;  %vm694_vm1 = vcmask (!%p1799_p10), 7168  }
  0x12   : > { %s2329_s25 = scalar_lea.vmem %s3305_s0, %s1789_s22  ;;  %s2334_s29 = scalar_lea.vmem %s3306_s1, %s1791_s26 }
  0x13   : > { %s2339_s7 = scalar_lea.vmem %s3308_s3, %s1789_s22  ;;  %s3340_s9 = smov (!%p284_p7, %s288_s9), %s287_s8  ;;  %v2348_v0 = vld [vmem:[%s2329_s25 + $0x10] sm:$0xff] (!%p1799_p10)  ;;  %v2351_v1 = vld [vmem:[%s2329_s25] sm:$0xff] (!%p1799_p10)  ;;  %v2354_v2 = vld [vmem:[%s2329_s25 + $0x18] sm:$0xff] (!%p1799_p10) }
  0x14   : > { %p1794_p8 = scmp.lt.s32.totalorder %s3340_s9, 0  ;;  %s294_s10 = sadd.s32 2, %s3340_s9  ;;  %v343_v3 = vmul.f32 (!%p1799_p10), %v2348_v0, %v2348_v0  ;;  %v341_v4 = vmul.f32 (!%p1799_p10), %v2351_v1, %v2351_v1  ;;  %v344_v5 = vmul.f32 (!%p1799_p10), %v2354_v2, %v2354_v2  ;;  %v2363_v6 = vld [vmem:[%s2329_s25 + $0x8] sm:$0xff] (!%p1799_p10)  ;;  %v2371_v9 = vld [vmem:[%s2329_s25 + $0x20] sm:$0xff] (!%p1799_p10)  ;;  %v2382_v16 = vld [vmem:[%s2329_s25 + $0x38] sm:$0xff] (!%p1799_p10) }
  0x15   : > { %v342_v7 = vmul.f32 (!%p1799_p10), %v2363_v6, %v2363_v6  ;;  %v2368_v8 = vld [vmem:[%s2329_s25 + $0x28] sm:$0xff] (!%p1799_p10)  ;;  %v345_v15 = vmul.f32 (!%p1799_p10), %v2371_v9, %v2371_v9  ;;  %v2385_v17 = vld [vmem:[%s2329_s25 + $0x30] sm:$0xff] (!%p1799_p10)  ;;  %v348_v20 = vmul.f32 (!%p1799_p10), %v2382_v16, %v2382_v16  ;;  %v2397_v23 = vld [vmem:[%s2329_s25 + $0x40] sm:$0xff] (!%p1799_p10) }
  0x16   : > { %s3342_s10 = smov (!%p1794_p8, %s294_s10), %s3340_s9  ;;  %324 = sbr.rel (%p1799_p10) target bundleno = 390 (0x186), region = 36 }
  0x17   : > { %s1795_s11 = sshll.u32 %s3342_s10, 4  ;;  %v364_v10 = vsel (!%p1799_p10), %vm357_vm0, %v343_v3, 0.0  ;;  %v358_v11 = vsel (!%p1799_p10), %vm357_vm0, %v341_v4, 0.0  ;;  %v367_v12 = vsel (!%p1799_p10), %vm357_vm0, %v344_v5, 0.0  ;;  %v361_v13 = vsel (!%p1799_p10), %vm357_vm0, %v342_v7, 0.0  ;;  %v2394_v22 = vld [vmem:[%s2329_s25 + $0x48] sm:$0xff] (!%p1799_p10) }
  0x18   : > { %p297_p9 = scmp.lt.s32.totalorder %s1795_s11, 31  ;;  %365 = vadd.xlane.f32.xlu1 (!%p1799_p10), %v364_v10  ;;  %359 = vadd.xlane.f32.xlu0 (!%p1799_p10), %v358_v11  ;;  %v346_v14 = vmul.f32 (!%p1799_p10), %v2368_v8, %v2368_v8  ;;  %v370_v19 = vsel (!%p1799_p10), %vm357_vm0, %v345_v15, 0.0  ;;  %v347_v21 = vmul.f32 (!%p1799_p10), %v2385_v17, %v2385_v17  ;;  %v379_v24 = vsel (!%p1799_p10), %vm357_vm0, %v348_v20, 0.0  ;;  %v2406_v28 = vld [vmem:[%s2329_s25 + $0x58] sm:$0xff] (!%p1799_p10)  ;;  %v2409_v29 = vld [vmem:[%s2329_s25 + $0x50] sm:$0xff] (!%p1799_p10)  ;;  %v2418_v34 = vld [vmem:[%s2329_s25 + $0x68] sm:$0xff] (!%p1799_p10) }
  0x19   : > { %v350_v26 = vmul.f32 (!%p1799_p10), %v2394_v22, %v2394_v22  ;;  %v349_v27 = vmul.f32 (!%p1799_p10), %v2397_v23, %v2397_v23  ;;  %v352_v32 = vmul.f32 (!%p1799_p10), %v2406_v28, %v2406_v28  ;;  %v351_v33 = vmul.f32 (!%p1799_p10), %v2409_v29, %v2409_v29  ;;  %v2421_v35 = vld [vmem:[%s2329_s25 + $0x60] sm:$0xff] (!%p1799_p10)  ;;  %v2430_v40 = vld [vmem:[%s2329_s25 + $0x78] sm:$0xff] (!%p1799_p10)  ;;  %v2433_v41 = vld [vmem:[%s2329_s25 + $0x70] sm:$0xff] (!%p1799_p10) }
  0x1a   : > { %s3344_s11 = smov (!%p297_p9, %s1795_s11), 31  ;;  %v373_v18 = vsel (!%p1799_p10), %vm357_vm0, %v346_v14, 0.0  ;;  %v376_v25 = vsel (!%p1799_p10), %vm357_vm0, %v347_v21, 0.0  ;;  %v354_v38 = vmul.f32 (!%p1799_p10), %v2418_v34, %v2418_v34  ;;  %v353_v39 = vmul.f32 (!%p1799_p10), %v2421_v35, %v2421_v35 }
  0x1b   : > { %s1796_s19 = sshll.u32 %s3344_s11, 3  ;;  %v385_v30 = vsel (!%p1799_p10), %vm357_vm0, %v350_v26, 0.0  ;;  %v382_v31 = vsel (!%p1799_p10), %vm357_vm0, %v349_v27, 0.0  ;;  %v391_v36 = vsel (!%p1799_p10), %vm357_vm0, %v352_v32, 0.0  ;;  %v388_v37 = vsel (!%p1799_p10), %vm357_vm0, %v351_v33, 0.0 }
  0x1c   : > { %s2344_s24 = scalar_lea.vmem %s3307_s2, %s1796_s19  ;;  %368 = vadd.xlane.f32.xlu1 (!%p1799_p10), %v367_v12  ;;  %362 = vadd.xlane.f32.xlu0 (!%p1799_p10), %v361_v13  ;;  %v397_v42 = vsel (!%p1799_p10), %vm357_vm0, %v354_v38, 0.0  ;;  %v394_v43 = vsel (!%p1799_p10), %vm357_vm0, %v353_v39, 0.0  ;;  %v356_v44 = vmul.f32 (!%p1799_p10), %v2430_v40, %v2430_v40  ;;  %v355_v45 = vmul.f32 (!%p1799_p10), %v2433_v41, %v2433_v41 }
  0x1d   : > { %v2442_v46 = vld [vmem:[%s2344_s24 + $0x8] sm:$0xff]  ;;  %v2445_v47 = vld [vmem:[%s2344_s24] sm:$0xff]  ;;  %v2454_v52 = vld [vmem:[%s2344_s24 + $0x18] sm:$0xff] }
  0x1e   : > { %v403_v48 = vsel %vm357_vm0, %v356_v44, 0.0  ;;  %v400_v49 = vsel %vm357_vm0, %v355_v45, 0.0  ;;  %v503_v50 = vmul.f32 %v2442_v46, %v2442_v46  ;;  %v502_v51 = vmul.f32 %v2445_v47, %v2445_v47  ;;  %v2457_v53 = vld [vmem:[%s2344_s24 + $0x10] sm:$0xff]  ;;  %v2466_v58 = vld [vmem:[%s2344_s24 + $0x28] sm:$0xff]  ;;  %v2469_v59 = vld [vmem:[%s2344_s24 + $0x20] sm:$0xff] }
  0x1f   : > { %v505_v56 = vmul.f32 %v2454_v52, %v2454_v52  ;;  %v504_v57 = vmul.f32 %v2457_v53, %v2457_v53  ;;  %v507_v62 = vmul.f32 %v2466_v58, %v2466_v58  ;;  %v506_v63 = vmul.f32 %v2469_v59, %v2469_v59  ;;  %v2478_v3 = vld [vmem:[%s2344_s24 + $0x38] sm:$0xff]  ;;  %v2481_v4 = vld [vmem:[%s2344_s24 + $0x30] sm:$0xff]  ;;  %v2490_v12 = vld [vmem:[%s2344_s24 + $0x48] sm:$0xff] }
  0x20   : > { %374 = vadd.xlane.f32.xlu1 %v373_v18  ;;  %371 = vadd.xlane.f32.xlu0 %v370_v19  ;;  %v521_v54 = vsel %vm357_vm0, %v503_v50, 0.0  ;;  %v518_v55 = vsel %vm357_vm0, %v502_v51, 0.0  ;;  %v509_v10 = vmul.f32 %v2478_v3, %v2478_v3  ;;  %v508_v11 = vmul.f32 %v2481_v4, %v2481_v4  ;;  %v2493_v13 = vld [vmem:[%s2344_s24 + $0x40] sm:$0xff]  ;;  %v2502_v20 = vld [vmem:[%s2344_s24 + $0x58] sm:$0xff]  ;;  %v2505_v21 = vld [vmem:[%s2344_s24 + $0x50] sm:$0xff] }
  0x21   : > { %v527_v60 = vsel %vm357_vm0, %v505_v56, 0.0  ;;  %v524_v61 = vsel %vm357_vm0, %v504_v57, 0.0  ;;  %v533_v5 = vsel %vm357_vm0, %v507_v62, 0.0  ;;  %v530_v7 = vsel %vm357_vm0, %v506_v63, 0.0  ;;  %v2526_v38 = vld [vmem:[%s2344_s24 + $0x78] sm:$0xff]  ;;  %v2529_v39 = vld [vmem:[%s2344_s24 + $0x70] sm:$0xff] }
  0x22   : > { %v539_v14 = vsel %vm357_vm0, %v509_v10, 0.0  ;;  %v536_v15 = vsel %vm357_vm0, %v508_v11, 0.0  ;;  %v511_v18 = vmul.f32 %v2490_v12, %v2490_v12  ;;  %v510_v19 = vmul.f32 %v2493_v13, %v2493_v13 }
  0x23   : > { %v513_v26 = vmul.f32 %v2502_v20, %v2502_v20  ;;  %v512_v27 = vmul.f32 %v2505_v21, %v2505_v21  ;;  %v517_v44 = vmul.f32 %v2526_v38, %v2526_v38  ;;  %v516_v45 = vmul.f32 %v2529_v39, %v2529_v39 }
  0x24   : > { %380 = vadd.xlane.f32.xlu1 %v379_v24  ;;  %377 = vadd.xlane.f32.xlu0 %v376_v25  ;;  %v545_v24 = vsel %vm357_vm0, %v511_v18, 0.0  ;;  %v542_v25 = vsel %vm357_vm0, %v510_v19, 0.0  ;;  %v2266_v50 = vmov -inf   ;;  %v2267_v51 = vmov 0.0  }
  0x25   : > { %v551_v32 = vsel %vm357_vm0, %v513_v26, 0.0  ;;  %v548_v33 = vsel %vm357_vm0, %v512_v27, 0.0  ;;  %711 = vst.msk [vmem:[#allocation4] sm:$0xff] %vm694_vm1, %v2266_v50  ;;  %712 = vst.msk [vmem:[#allocation4 + $0x8] sm:$0xff] %vm694_vm1, %v2266_v50 }
  0x26   : > { %713 = vst.msk [vmem:[#allocation4 + $0x10] sm:$0xff] %vm694_vm1, %v2266_v50  ;;  %714 = vst.msk [vmem:[#allocation4 + $0x18] sm:$0xff] %vm694_vm1, %v2266_v50 }
  0x27   : > { %715 = vst.msk [vmem:[#allocation4 + $0x20] sm:$0xff] %vm694_vm1, %v2266_v50  ;;  %716 = vst.msk [vmem:[#allocation4 + $0x28] sm:$0xff] %vm694_vm1, %v2266_v50 }
  0x28   : > { %386 = vadd.xlane.f32.xlu1 %v385_v30  ;;  %383 = vadd.xlane.f32.xlu0 %v382_v31  ;;  %v2514_v30 = vld [vmem:[%s2344_s24 + $0x68] sm:$0xff]  ;;  %v2517_v31 = vld [vmem:[%s2344_s24 + $0x60] sm:$0xff]  ;;  %717 = vst.msk [vmem:[#allocation4 + $0x30] sm:$0xff] %vm694_vm1, %v2266_v50  ;;  %718 = vst.msk [vmem:[#allocation4 + $0x38] sm:$0xff] %vm694_vm1, %v2266_v50 }
  0x29   : > { %719 = vst.msk [vmem:[#allocation4 + $0x40] sm:$0xff] %vm694_vm1, %v2266_v50  ;;  %720 = vst.msk [vmem:[#allocation4 + $0x48] sm:$0xff] %vm694_vm1, %v2266_v50 }
  0x2a   : > { %721 = vst.msk [vmem:[#allocation4 + $0x50] sm:$0xff] %vm694_vm1, %v2266_v50  ;;  %722 = vst.msk [vmem:[#allocation4 + $0x58] sm:$0xff] %vm694_vm1, %v2266_v50 }
  0x2b   : > { %723 = vst.msk [vmem:[#allocation4 + $0x60] sm:$0xff] %vm694_vm1, %v2266_v50  ;;  %724 = vst.msk [vmem:[#allocation4 + $0x68] sm:$0xff] %vm694_vm1, %v2266_v50 }
  0x2c   : > { %392 = vadd.xlane.f32.xlu1 %v391_v36  ;;  %389 = vadd.xlane.f32.xlu0 %v388_v37  ;;  %v515_v36 = vmul.f32 %v2514_v30, %v2514_v30  ;;  %v514_v37 = vmul.f32 %v2517_v31, %v2517_v31  ;;  %725 = vst.msk [vmem:[#allocation4 + $0x70] sm:$0xff] %vm694_vm1, %v2266_v50  ;;  %726 = vst.msk [vmem:[#allocation4 + $0x78] sm:$0xff] %vm694_vm1, %v2266_v50 }
  0x2d   : > { %727 = vst.msk [vmem:[#allocation5] sm:$0xff] %vm694_vm1, %v2267_v51  ;;  %728 = vst.msk [vmem:[#allocation5 + $0x8] sm:$0xff] %vm694_vm1, %v2267_v51 }
  0x2e   : > { %729 = vst.msk [vmem:[#allocation5 + $0x10] sm:$0xff] %vm694_vm1, %v2267_v51  ;;  %730 = vst.msk [vmem:[#allocation5 + $0x18] sm:$0xff] %vm694_vm1, %v2267_v51 }
  0x2f   : > { %731 = vst.msk [vmem:[#allocation5 + $0x20] sm:$0xff] %vm694_vm1, %v2267_v51  ;;  %732 = vst.msk [vmem:[#allocation5 + $0x28] sm:$0xff] %vm694_vm1, %v2267_v51 }
  0x30   : > { %398 = vadd.xlane.f32.xlu1 %v397_v42  ;;  %395 = vadd.xlane.f32.xlu0 %v394_v43  ;;  %v557_v42 = vsel %vm357_vm0, %v515_v36, 0.0  ;;  %v554_v43 = vsel %vm357_vm0, %v514_v37, 0.0  ;;  %733 = vst.msk [vmem:[#allocation5 + $0x30] sm:$0xff] %vm694_vm1, %v2267_v51  ;;  %734 = vst.msk [vmem:[#allocation5 + $0x38] sm:$0xff] %vm694_vm1, %v2267_v51 }
  0x31   : > { %735 = vst.msk [vmem:[#allocation5 + $0x40] sm:$0xff] %vm694_vm1, %v2267_v51  ;;  %736 = vst.msk [vmem:[#allocation5 + $0x48] sm:$0xff] %vm694_vm1, %v2267_v51 }
  0x32   : > { %737 = vst.msk [vmem:[#allocation5 + $0x50] sm:$0xff] %vm694_vm1, %v2267_v51  ;;  %738 = vst.msk [vmem:[#allocation5 + $0x58] sm:$0xff] %vm694_vm1, %v2267_v51 }
  0x33   : > { %739 = vst.msk [vmem:[#allocation5 + $0x60] sm:$0xff] %vm694_vm1, %v2267_v51  ;;  %740 = vst.msk [vmem:[#allocation5 + $0x68] sm:$0xff] %vm694_vm1, %v2267_v51 }
  0x34   : > { %404 = vadd.xlane.f32.xlu1 %v403_v48  ;;  %401 = vadd.xlane.f32.xlu0 %v400_v49  ;;  %v563_v48 = vsel %vm357_vm0, %v517_v44, 0.0  ;;  %v560_v49 = vsel %vm357_vm0, %v516_v45, 0.0  ;;  %741 = vst.msk [vmem:[#allocation5 + $0x70] sm:$0xff] %vm694_vm1, %v2267_v51  ;;  %742 = vst.msk [vmem:[#allocation5 + $0x78] sm:$0xff] %vm694_vm1, %v2267_v51 }
  0x38   : > { %522 = vadd.xlane.f32.xlu1 %v521_v54  ;;  %519 = vadd.xlane.f32.xlu0 %v518_v55 }
  0x3c   : > { %528 = vadd.xlane.f32.xlu1 %v527_v60  ;;  %525 = vadd.xlane.f32.xlu0 %v524_v61 }
  0x40   : > { %534 = vadd.xlane.f32.xlu1 %v533_v5  ;;  %531 = vadd.xlane.f32.xlu0 %v530_v7 }
  0x44   : > { %540 = vadd.xlane.f32.xlu1 %v539_v14  ;;  %537 = vadd.xlane.f32.xlu0 %v536_v15 }
  0x48   : > { %546 = vadd.xlane.f32.xlu1 %v545_v24  ;;  %543 = vadd.xlane.f32.xlu0 %v542_v25 }
  0x4c   : > { %552 = vadd.xlane.f32.xlu1 %v551_v32  ;;  %549 = vadd.xlane.f32.xlu0 %v548_v33 }
  0x50   : > { %558 = vadd.xlane.f32.xlu1 %v557_v42  ;;  %555 = vadd.xlane.f32.xlu0 %v554_v43 }
  0x54   : > { %564 = vadd.xlane.f32.xlu1 %v563_v48  ;;  %561 = vadd.xlane.f32.xlu0 %v560_v49 }
  0xa5   : > { %v366_v54 = vpop.xlane.xlu1 %365  ;;  %v360_v55 = vpop.xlane.xlu0 %359 }
  0xa6   : > { %v408_v56 = vmax.f32 %v366_v54, 1e-16  ;;  %v406_v57 = vmax.f32 %v360_v55, 1e-16 }
  0xa8   : > { %2032 = vrsqrt.f32 %v408_v56 }
  0xa9   : > { %2034 = vrsqrt.f32 %v406_v57  ;;  %v369_v60 = vpop.xlane.xlu1 %368  ;;  %v363_v61 = vpop.xlane.xlu0 %362 }
  0xaa   : > { %v409_v62 = vmax.f32 %v369_v60, 1e-16  ;;  %v407_v63 = vmax.f32 %v363_v61, 1e-16 }
  0xac   : > { %2036 = vrsqrt.f32 %v409_v62 }
  0xad   : > { %2038 = vrsqrt.f32 %v407_v63  ;;  %v375_v5 = vpop.xlane.xlu1 %374  ;;  %v372_v7 = vpop.xlane.xlu0 %371 }
  0xae   : > { %v411_v10 = vmax.f32 %v375_v5, 1e-16  ;;  %v410_v11 = vmax.f32 %v372_v7, 1e-16 }
  0xb0   : > { %2040 = vrsqrt.f32 %v411_v10 }
  0xb1   : > { %2042 = vrsqrt.f32 %v410_v11  ;;  %v381_v14 = vpop.xlane.xlu1 %380  ;;  %v378_v15 = vpop.xlane.xlu0 %377 }
  0xb2   : > { %v2033_v18 = vpop.eup %2032  ;;  %v413_v19 = vmax.f32 %v381_v14, 1e-16  ;;  %v412_v24 = vmax.f32 %v378_v15, 1e-16 }
  0xb3   : > { %v2035_v25 = vpop.eup %2034  ;;  %v2572_v26 = vmul.f32 %v2033_v18, %v2348_v0 }
  0xb4   : > { %2044 = vrsqrt.f32 %v413_v19  ;;  %v2575_v27 = vmul.f32 %v2035_v25, %v2351_v1 }
  0xb5   : > { %2046 = vrsqrt.f32 %v412_v24  ;;  %v387_v32 = vpop.xlane.xlu1 %386  ;;  %v384_v33 = vpop.xlane.xlu0 %383  ;;  %v456_v36 = vmul.f32 2.0, %v2572_v26 }
  0xb6   : > { %v2037_v37 = vpop.eup %2036  ;;  %v415_v42 = vmax.f32 %v387_v32, 1e-16  ;;  %v414_v43 = vmax.f32 %v384_v33, 1e-16  ;;  %v454_v44 = vmul.f32 2.0, %v2575_v27 }
  0xb7   : > { %v2039_v45 = vpop.eup %2038  ;;  %v2580_v48 = vmul.f32 %v2037_v37, %v2354_v2  ;;  %472 = vst.msk [vmem:[#allocation2 + $0x10] sm:$0xff] %vm357_vm0, %v456_v36 }
  0xb8   : > { %2048 = vrsqrt.f32 %v415_v42  ;;  %v2584_v0 = vmul.f32 %v2039_v45, %v2363_v6  ;;  %470 = vst.msk [vmem:[#allocation2] sm:$0xff] %vm357_vm0, %v454_v44 }
  0xb9   : > { %2050 = vrsqrt.f32 %v414_v43  ;;  %v393_v1 = vpop.xlane.xlu1 %392  ;;  %v390_v49 = vpop.xlane.xlu0 %389  ;;  %v457_v50 = vmul.f32 2.0, %v2580_v48 }
  0xba   : > { %v2041_v51 = vpop.eup %2040  ;;  %v417_v54 = vmax.f32 %v393_v1, 1e-16  ;;  %v416_v55 = vmax.f32 %v390_v49, 1e-16  ;;  %v455_v56 = vmul.f32 2.0, %v2584_v0 }
  0xbb   : > { %v2043_v2 = vpop.eup %2042  ;;  %473 = vst.msk [vmem:[#allocation2 + $0x18] sm:$0xff] %vm357_vm0, %v457_v50  ;;  %v2591_v57 = vmul.f32 %v2041_v51, %v2368_v8 }
  0xbc   : > { %2052 = vrsqrt.f32 %v417_v54  ;;  %471 = vst.msk [vmem:[#allocation2 + $0x8] sm:$0xff] %vm357_vm0, %v455_v56  ;;  %v2595_v6 = vmul.f32 %v2043_v2, %v2371_v9 }
  0xbd   : > { %2054 = vrsqrt.f32 %v416_v55  ;;  %v399_v60 = vpop.xlane.xlu1 %398  ;;  %v396_v61 = vpop.xlane.xlu0 %395  ;;  %v459_v62 = vmul.f32 2.0, %v2591_v57 }
  0xbe   : > { %v2045_v63 = vpop.eup %2044  ;;  %v419_v5 = vmax.f32 %v399_v60, 1e-16  ;;  %v418_v7 = vmax.f32 %v396_v61, 1e-16  ;;  %v458_v10 = vmul.f32 2.0, %v2595_v6 }
  0xbf   : > { %v2047_v11 = vpop.eup %2046  ;;  %475 = vst.msk [vmem:[#allocation2 + $0x28] sm:$0xff] %vm357_vm0, %v459_v62  ;;  %v2601_v8 = vmul.f32 %v2045_v63, %v2382_v16 }
  0xc0   : > { %2056 = vrsqrt.f32 %v419_v5  ;;  %474 = vst.msk [vmem:[#allocation2 + $0x20] sm:$0xff] %vm357_vm0, %v458_v10  ;;  %v2605_v9 = vmul.f32 %v2047_v11, %v2385_v17 }
  0xc1   : > { %2058 = vrsqrt.f32 %v418_v7  ;;  %v405_v14 = vpop.xlane.xlu1 %404  ;;  %v402_v15 = vpop.xlane.xlu0 %401  ;;  %v461_v18 = vmul.f32 2.0, %v2601_v8 }
  0xc2   : > { %v2049_v19 = vpop.eup %2048  ;;  %v421_v24 = vmax.f32 %v405_v14, 1e-16  ;;  %v420_v25 = vmax.f32 %v402_v15, 1e-16  ;;  %v460_v32 = vmul.f32 2.0, %v2605_v9 }
  0xc3   : > { %v2051_v33 = vpop.eup %2050  ;;  %477 = vst.msk [vmem:[#allocation2 + $0x38] sm:$0xff] %vm357_vm0, %v461_v18  ;;  %v2611_v16 = vmul.f32 %v2049_v19, %v2394_v22 }
  0xc4   : > { %2060 = vrsqrt.f32 %v421_v24  ;;  %476 = vst.msk [vmem:[#allocation2 + $0x30] sm:$0xff] %vm357_vm0, %v460_v32  ;;  %v2615_v17 = vmul.f32 %v2051_v33, %v2397_v23 }
  0xc5   : > { %2062 = vrsqrt.f32 %v420_v25  ;;  %v523_v36 = vpop.xlane.xlu1 %522  ;;  %v520_v37 = vpop.xlane.xlu0 %519  ;;  %v463_v42 = vmul.f32 2.0, %v2611_v16 }
  0xc6   : > { %v2053_v43 = vpop.eup %2052  ;;  %v567_v44 = vmax.f32 %v523_v36, 1e-16  ;;  %v566_v45 = vmax.f32 %v520_v37, 1e-16  ;;  %v462_v1 = vmul.f32 2.0, %v2615_v17 }
  0xc7   : > { %v2055_v49 = vpop.eup %2054  ;;  %479 = vst.msk [vmem:[#allocation2 + $0x48] sm:$0xff] %vm357_vm0, %v463_v42  ;;  %v2621_v22 = vmul.f32 %v2053_v43, %v2406_v28 }
  0xc8   : > { %2064 = vrsqrt.f32 %v567_v44  ;;  %478 = vst.msk [vmem:[#allocation2 + $0x40] sm:$0xff] %vm357_vm0, %v462_v1  ;;  %v2625_v23 = vmul.f32 %v2055_v49, %v2409_v29 }
  0xc9   : > { %2066 = vrsqrt.f32 %v566_v45  ;;  %v529_v50 = vpop.xlane.xlu1 %528  ;;  %v526_v51 = vpop.xlane.xlu0 %525  ;;  %v465_v54 = vmul.f32 2.0, %v2621_v22 }
  0xca   : > { %v2057_v55 = vpop.eup %2056  ;;  %v569_v56 = vmax.f32 %v529_v50, 1e-16  ;;  %v568_v2 = vmax.f32 %v526_v51, 1e-16  ;;  %v464_v60 = vmul.f32 2.0, %v2625_v23 }
  0xcb   : > { %v2059_v61 = vpop.eup %2058  ;;  %481 = vst.msk [vmem:[#allocation2 + $0x58] sm:$0xff] %vm357_vm0, %v465_v54  ;;  %v2631_v28 = vmul.f32 %v2057_v55, %v2418_v34 }
  0xcc   : > { %2068 = vrsqrt.f32 %v569_v56  ;;  %480 = vst.msk [vmem:[#allocation2 + $0x50] sm:$0xff] %vm357_vm0, %v464_v60  ;;  %v2635_v29 = vmul.f32 %v2059_v61, %v2421_v35 }
  0xcd   : > { %2070 = vrsqrt.f32 %v568_v2  ;;  %v535_v62 = vpop.xlane.xlu1 %534  ;;  %v532_v63 = vpop.xlane.xlu0 %531  ;;  %v467_v5 = vmul.f32 2.0, %v2631_v28 }
  0xce   : > { %v2061_v7 = vpop.eup %2060  ;;  %v571_v10 = vmax.f32 %v535_v62, 1e-16  ;;  %v570_v11 = vmax.f32 %v532_v63, 1e-16  ;;  %v466_v14 = vmul.f32 2.0, %v2635_v29 }
  0xcf   : > { %v2063_v15 = vpop.eup %2062  ;;  %483 = vst.msk [vmem:[#allocation2 + $0x68] sm:$0xff] %vm357_vm0, %v467_v5  ;;  %v2641_v34 = vmul.f32 %v2061_v7, %v2430_v40 }
  0xd0   : > { %2072 = vrsqrt.f32 %v571_v10  ;;  %482 = vst.msk [vmem:[#allocation2 + $0x60] sm:$0xff] %vm357_vm0, %v466_v14  ;;  %v2645_v35 = vmul.f32 %v2063_v15, %v2433_v41 }
  0xd1   : > { %2074 = vrsqrt.f32 %v570_v11  ;;  %v541_v18 = vpop.xlane.xlu1 %540  ;;  %v538_v19 = vpop.xlane.xlu0 %537  ;;  %v469_v24 = vmul.f32 2.0, %v2641_v34 }
  0xd2   : > { %v2065_v25 = vpop.eup %2064  ;;  %v573_v32 = vmax.f32 %v541_v18, 1e-16  ;;  %v572_v33 = vmax.f32 %v538_v19, 1e-16  ;;  %v468_v36 = vmul.f32 2.0, %v2645_v35 }
  0xd3   : > { %v2067_v37 = vpop.eup %2066  ;;  %v599_v40 = vmul.f32 %v2065_v25, %v2442_v46  ;;  %485 = vst.msk [vmem:[#allocation2 + $0x78] sm:$0xff] %vm357_vm0, %v469_v24 }
  0xd4   : > { %2076 = vrsqrt.f32 %v573_v32  ;;  %v598_v42 = vmul.f32 %v2067_v37, %v2445_v47  ;;  %484 = vst.msk [vmem:[#allocation2 + $0x70] sm:$0xff] %vm357_vm0, %v468_v36 }
  0xd5   : > { %2078 = vrsqrt.f32 %v572_v33  ;;  %v547_v41 = vpop.xlane.xlu1 %546  ;;  %v544_v43 = vpop.xlane.xlu0 %543  ;;  %v615_v44 = vmul.f32 %v599_v40, %v2584_v0 }
  0xd6   : > { %v2069_v45 = vpop.eup %2068  ;;  %v575_v1 = vmax.f32 %v547_v41, 1e-16  ;;  %v574_v49 = vmax.f32 %v544_v43, 1e-16  ;;  %v614_v50 = vmul.f32 %v598_v42, %v2575_v27 }
  0xd7   : > { %v2071_v51 = vpop.eup %2070  ;;  %v633_v46 = vsel %vm357_vm0, %v615_v44, 0.0  ;;  %v601_v54 = vmul.f32 %v2069_v45, %v2454_v52 }
  0xd8   : > { %2080 = vrsqrt.f32 %v575_v1  ;;  %634 = vadd.xlane.f32.xlu1 %v633_v46  ;;  %v630_v47 = vsel %vm357_vm0, %v614_v50, 0.0  ;;  %v600_v55 = vmul.f32 %v2071_v51, %v2457_v53 }
  0xd9   : > { %2082 = vrsqrt.f32 %v574_v49  ;;  %631 = vadd.xlane.f32.xlu0 %v630_v47  ;;  %v553_v56 = vpop.xlane.xlu1 %552  ;;  %v550_v0 = vpop.xlane.xlu0 %549  ;;  %v617_v2 = vmul.f32 %v601_v54, %v2580_v48 }
  0xda   : > { %v2073_v60 = vpop.eup %2072  ;;  %v577_v61 = vmax.f32 %v553_v56, 1e-16  ;;  %v576_v27 = vmax.f32 %v550_v0, 1e-16  ;;  %v616_v62 = vmul.f32 %v600_v55, %v2572_v26 }
  0xdb   : > { %v2075_v63 = vpop.eup %2074  ;;  %v639_v52 = vsel %vm357_vm0, %v617_v2, 0.0  ;;  %v603_v5 = vmul.f32 %v2073_v60, %v2466_v58 }
  0xdc   : > { %2084 = vrsqrt.f32 %v577_v61  ;;  %640 = vadd.xlane.f32.xlu1 %v639_v52  ;;  %v636_v53 = vsel %vm357_vm0, %v616_v62, 0.0  ;;  %v602_v7 = vmul.f32 %v2075_v63, %v2469_v59 }
  0xdd   : > { %2086 = vrsqrt.f32 %v576_v27  ;;  %637 = vadd.xlane.f32.xlu0 %v636_v53  ;;  %v559_v10 = vpop.xlane.xlu1 %558  ;;  %v556_v48 = vpop.xlane.xlu0 %555  ;;  %v619_v11 = vmul.f32 %v603_v5, %v2591_v57 }
  0xde   : > { %v2077_v14 = vpop.eup %2076  ;;  %v579_v15 = vmax.f32 %v559_v10, 1e-16  ;;  %v578_v26 = vmax.f32 %v556_v48, 1e-16  ;;  %v618_v18 = vmul.f32 %v602_v7, %v2595_v6 }
  0xdf   : > { %v2079_v19 = vpop.eup %2078  ;;  %v645_v58 = vsel %vm357_vm0, %v619_v11, 0.0  ;;  %v605_v24 = vmul.f32 %v2077_v14, %v2478_v3 }
  0xe0   : > { %2088 = vrsqrt.f32 %v579_v15  ;;  %646 = vadd.xlane.f32.xlu1 %v645_v58  ;;  %v642_v59 = vsel %vm357_vm0, %v618_v18, 0.0  ;;  %v604_v25 = vmul.f32 %v2079_v19, %v2481_v4 }
  0xe1   : > { %2090 = vrsqrt.f32 %v578_v26  ;;  %643 = vadd.xlane.f32.xlu0 %v642_v59  ;;  %v565_v32 = vpop.xlane.xlu1 %564  ;;  %v562_v57 = vpop.xlane.xlu0 %561  ;;  %v621_v33 = vmul.f32 %v605_v24, %v2601_v8 }
  0xe2   : > { %v2081_v36 = vpop.eup %2080  ;;  %v581_v37 = vmax.f32 %v565_v32, 1e-16  ;;  %v580_v6 = vmax.f32 %v562_v57, 1e-16  ;;  %v620_v40 = vmul.f32 %v604_v25, %v2605_v9 }
  0xe3   : > { %v2083_v42 = vpop.eup %2082  ;;  %v651_v3 = vsel %vm357_vm0, %v621_v33, 0.0  ;;  %v607_v41 = vmul.f32 %v2081_v36, %v2490_v12 }
  0xe4   : > { %2092 = vrsqrt.f32 %v581_v37  ;;  %652 = vadd.xlane.f32.xlu1 %v651_v3  ;;  %v648_v4 = vsel %vm357_vm0, %v620_v40, 0.0  ;;  %v606_v43 = vmul.f32 %v2083_v42, %v2493_v13 }
  0xe5   : > { %2094 = vrsqrt.f32 %v580_v6  ;;  %649 = vadd.xlane.f32.xlu0 %v648_v4  ;;  %v623_v8 = vmul.f32 %v607_v41, %v2611_v16 }
  0xe6   : > { %v2085_v44 = vpop.eup %2084  ;;  %v622_v45 = vmul.f32 %v606_v43, %v2615_v17 }
  0xe7   : > { %v2087_v1 = vpop.eup %2086  ;;  %v657_v9 = vsel %vm357_vm0, %v623_v8, 0.0  ;;  %v609_v49 = vmul.f32 %v2085_v44, %v2502_v20 }
  0xe8   : > { %658 = vadd.xlane.f32.xlu1 %v657_v9  ;;  %v654_v12 = vsel %vm357_vm0, %v622_v45, 0.0  ;;  %v608_v50 = vmul.f32 %v2087_v1, %v2505_v21 }
  0xe9   : > { %655 = vadd.xlane.f32.xlu0 %v654_v12  ;;  %v625_v13 = vmul.f32 %v609_v49, %v2621_v22 }
  0xea   : > { %v2089_v51 = vpop.eup %2088  ;;  %v624_v46 = vmul.f32 %v608_v50, %v2625_v23 }
  0xeb   : > { %v2091_v16 = vpop.eup %2090  ;;  %v663_v54 = vsel %vm357_vm0, %v625_v13, 0.0  ;;  %v611_v17 = vmul.f32 %v2089_v51, %v2514_v30 }
  0xec   : > { %664 = vadd.xlane.f32.xlu1 %v663_v54  ;;  %v660_v47 = vsel %vm357_vm0, %v624_v46, 0.0  ;;  %v610_v20 = vmul.f32 %v2091_v16, %v2517_v31 }
  0xed   : > { %661 = vadd.xlane.f32.xlu0 %v660_v47  ;;  %v627_v55 = vmul.f32 %v611_v17, %v2631_v28 }
  0xee   : > { %v2093_v21 = vpop.eup %2092  ;;  %v626_v56 = vmul.f32 %v610_v20, %v2635_v29 }
  0xef   : > { %v2095_v22 = vpop.eup %2094  ;;  %v669_v0 = vsel %vm357_vm0, %v627_v55, 0.0  ;;  %v613_v23 = vmul.f32 %v2093_v21, %v2526_v38 }
  0xf0   : > { %670 = vadd.xlane.f32.xlu1 %v669_v0  ;;  %v666_v2 = vsel %vm357_vm0, %v626_v56, 0.0  ;;  %v612_v30 = vmul.f32 %v2095_v22, %v2529_v39 }
  0xf1   : > { %667 = vadd.xlane.f32.xlu0 %v666_v2  ;;  %v629_v60 = vmul.f32 %v613_v23, %v2641_v34 }
  0xf2   : > { %v628_v31 = vmul.f32 %v612_v30, %v2645_v35 }
  0xf3   : > { %v675_v28 = vsel %vm357_vm0, %v629_v60, 0.0 }
  0xf4   : > { %676 = vadd.xlane.f32.xlu1 %v675_v28  ;;  %v672_v29 = vsel %vm357_vm0, %v628_v31, 0.0 }
  0xf5   : > { %673 = vadd.xlane.f32.xlu0 %v672_v29 }
 0x165   : > { %v635_v61 = vpop.xlane.xlu1 %634 }
 0x166   : > { %v679_v27 = vmul.f32 2.0, %v635_v61  ;;  %v632_v62 = vpop.xlane.xlu0 %631 }
 0x167   : > { %v678_v38 = vmul.f32 2.0, %v632_v62 }
 0x168   : > { %696 = vst.msk [vmem:[#allocation3 + $0x8] sm:$0xff] %vm694_vm1, %v679_v27 }
 0x169   : > { %695 = vst.msk [vmem:[#allocation3] sm:$0xff] %vm694_vm1, %v678_v38  ;;  %v641_v39 = vpop.xlane.xlu1 %640 }
 0x16a   : > { %v681_v63 = vmul.f32 2.0, %v641_v39  ;;  %v638_v52 = vpop.xlane.xlu0 %637 }
 0x16b   : > { %v680_v34 = vmul.f32 2.0, %v638_v52 }
 0x16c   : > { %698 = vst.msk [vmem:[#allocation3 + $0x18] sm:$0xff] %vm694_vm1, %v681_v63 }
 0x16d   : > { %697 = vst.msk [vmem:[#allocation3 + $0x10] sm:$0xff] %vm694_vm1, %v680_v34  ;;  %v647_v35 = vpop.xlane.xlu1 %646 }
 0x16e   : > { %v683_v5 = vmul.f32 2.0, %v647_v35  ;;  %v644_v53 = vpop.xlane.xlu0 %643 }
 0x16f   : > { %v682_v7 = vmul.f32 2.0, %v644_v53 }
 0x170   : > { %700 = vst.msk [vmem:[#allocation3 + $0x28] sm:$0xff] %vm694_vm1, %v683_v5 }
 0x171   : > { %699 = vst.msk [vmem:[#allocation3 + $0x20] sm:$0xff] %vm694_vm1, %v682_v7  ;;  %v653_v10 = vpop.xlane.xlu1 %652 }
 0x172   : > { %v685_v48 = vmul.f32 2.0, %v653_v10  ;;  %v650_v11 = vpop.xlane.xlu0 %649 }
 0x173   : > { %v684_v14 = vmul.f32 2.0, %v650_v11 }
 0x174   : > { %702 = vst.msk [vmem:[#allocation3 + $0x38] sm:$0xff] %vm694_vm1, %v685_v48 }
 0x175   : > { %701 = vst.msk [vmem:[#allocation3 + $0x30] sm:$0xff] %vm694_vm1, %v684_v14  ;;  %v659_v15 = vpop.xlane.xlu1 %658 }
 0x176   : > { %v687_v26 = vmul.f32 2.0, %v659_v15  ;;  %v656_v18 = vpop.xlane.xlu0 %655 }
 0x177   : > { %v686_v19 = vmul.f32 2.0, %v656_v18 }
 0x178   : > { %704 = vst.msk [vmem:[#allocation3 + $0x48] sm:$0xff] %vm694_vm1, %v687_v26 }
 0x179   : > { %703 = vst.msk [vmem:[#allocation3 + $0x40] sm:$0xff] %vm694_vm1, %v686_v19  ;;  %v665_v58 = vpop.xlane.xlu1 %664 }
 0x17a   : > { %v689_v24 = vmul.f32 2.0, %v665_v58  ;;  %v662_v59 = vpop.xlane.xlu0 %661 }
 0x17b   : > { %v688_v25 = vmul.f32 2.0, %v662_v59 }
 0x17c   : > { %706 = vst.msk [vmem:[#allocation3 + $0x58] sm:$0xff] %vm694_vm1, %v689_v24 }
 0x17d   : > { %705 = vst.msk [vmem:[#allocation3 + $0x50] sm:$0xff] %vm694_vm1, %v688_v25  ;;  %v671_v32 = vpop.xlane.xlu1 %670 }
 0x17e   : > { %v691_v57 = vmul.f32 2.0, %v671_v32  ;;  %v668_v33 = vpop.xlane.xlu0 %667 }
 0x17f   : > { %v690_v36 = vmul.f32 2.0, %v668_v33 }
 0x180   : > { %708 = vst.msk [vmem:[#allocation3 + $0x68] sm:$0xff] %vm694_vm1, %v691_v57 }
 0x181   : > { %707 = vst.msk [vmem:[#allocation3 + $0x60] sm:$0xff] %vm694_vm1, %v690_v36  ;;  %v677_v37 = vpop.xlane.xlu1 %676 }
 0x182   : > { %v693_v6 = vmul.f32 2.0, %v677_v37  ;;  %v674_v40 = vpop.xlane.xlu0 %673 }
 0x183   : > { %v692_v42 = vmul.f32 2.0, %v674_v40 }
 0x184   : > { %710 = vst.msk [vmem:[#allocation3 + $0x78] sm:$0xff] %vm694_vm1, %v693_v6 }
 0x185   : > { %709 = vst.msk [vmem:[#allocation3 + $0x70] sm:$0xff] %vm694_vm1, %v692_v42 }
 0x186 PF: > { %v2716_v3 = vld [vmem:[%s2334_s29] sm:$0xff]  ;;  %vm775_vm2 = vcmask 523264   ;;  %v2719_v41 = vld [vmem:[%s2334_s29 + $0x10] sm:$0xff]  ;;  %v2722_v4 = vld [vmem:[%s2334_s29 + $0x8] sm:$0xff]  ;;  %s1832_s21 = sshll.u32 %s2252_s13, 7  ;;  %s1833_s22 = sshll.u32 %s2248_s12, 7 }
 0x187   : > { %v759_v43 = vmul.f32 %v2716_v3, %v2716_v3  ;;  %v761_v8 = vmul.f32 %v2719_v41, %v2719_v41  ;;  %v760_v44 = vmul.f32 %v2722_v4, %v2722_v4  ;;  %v2731_v45 = vld [vmem:[%s2334_s29 + $0x18] sm:$0xff]  ;;  %v2736_v9 = vld [vmem:[%s2334_s29 + $0x28] sm:$0xff]  ;;  %v2739_v49 = vld [vmem:[%s2334_s29 + $0x20] sm:$0xff]  ;;  %s1166_s25 = ssub.s32 %s1832_s21, %s1833_s22  ;;  %p1834_p11 = scmp.ne.s32.totalorder %s2248_s12, 1 }
 0x188   : > { %v762_v1 = vmul.f32 %v2731_v45, %v2731_v45  ;;  %v764_v46 = vmul.f32 %v2736_v9, %v2736_v9  ;;  %v763_v16 = vmul.f32 %v2739_v49, %v2739_v49  ;;  %v2750_v54 = vld [vmem:[%s2334_s29 + $0x38] sm:$0xff]  ;;  %v2753_v17 = vld [vmem:[%s2334_s29 + $0x30] sm:$0xff]  ;;  %v2762_v56 = vld [vmem:[%s2334_s29 + $0x48] sm:$0xff] }
 0x189   : > { %v776_v12 = vsel %vm775_vm2, %v759_v43, 0.0  ;;  %v782_v50 = vsel %vm775_vm2, %v761_v8, 0.0  ;;  %v779_v13 = vsel %vm775_vm2, %v760_v44, 0.0  ;;  %v766_v55 = vmul.f32 %v2750_v54, %v2750_v54  ;;  %v2765_v22 = vld [vmem:[%s2334_s29 + $0x40] sm:$0xff]  ;;  %v2774_v60 = vld [vmem:[%s2334_s29 + $0x58] sm:$0xff]  ;;  %v2777_v31 = vld [vmem:[%s2334_s29 + $0x50] sm:$0xff] }
 0x18a   : > { %777 = vadd.xlane.f32.xlu0 %v776_v12  ;;  %783 = vadd.xlane.f32.xlu1 %v782_v50  ;;  %v785_v51 = vsel %vm775_vm2, %v762_v1, 0.0  ;;  %v791_v47 = vsel %vm775_vm2, %v764_v46, 0.0  ;;  %v788_v20 = vsel %vm775_vm2, %v763_v16, 0.0  ;;  %v765_v21 = vmul.f32 %v2753_v17, %v2753_v17  ;;  %v2786_v62 = vld [vmem:[%s2334_s29 + $0x68] sm:$0xff]  ;;  %v2789_v38 = vld [vmem:[%s2334_s29 + $0x60] sm:$0xff]  ;;  %v2798_v35 = vld [vmem:[%s2334_s29 + $0x78] sm:$0xff] }
 0x18b   : > { %v797_v0 = vsel %vm775_vm2, %v766_v55, 0.0  ;;  %v768_v2 = vmul.f32 %v2762_v56, %v2762_v56  ;;  %v767_v30 = vmul.f32 %v2765_v22, %v2765_v22  ;;  %v770_v61 = vmul.f32 %v2774_v60, %v2774_v60  ;;  %v2801_v5 = vld [vmem:[%s2334_s29 + $0x70] sm:$0xff]  ;;  %v872_v15 = vld [vmem:[#allocation2] sm:$0xff]  ;;  %vm2818_vm3 = vmpackc.low %vm775_vm2, %vm775_vm2 }
 0x18c   : > { %v794_v23 = vsel %vm775_vm2, %v765_v21, 0.0  ;;  %v769_v27 = vmul.f32 %v2777_v31, %v2777_v31  ;;  %v772_v52 = vmul.f32 %v2786_v62, %v2786_v62  ;;  %v771_v34 = vmul.f32 %v2789_v38, %v2789_v38  ;;  %1901 = vmatprep.mubr.msk.f32.mxu0 %vm775_vm2, %v872_v15  ;;  %v880_v26 = vld [vmem:[#allocation2 + $0x40] sm:$0xff] }
 0x18d   : > { %v803_v28 = vsel %vm775_vm2, %v768_v2, 0.0  ;;  %v800_v29 = vsel %vm775_vm2, %v767_v30, 0.0  ;;  %v809_v39 = vsel %vm775_vm2, %v770_v61, 0.0  ;;  %v774_v10 = vmul.f32 %v2798_v35, %v2798_v35  ;;  %1913 = vmatprep.mubr.msk.f32.mxu1 %vm775_vm2, %v880_v26 }
 0x18e   : > { %780 = vadd.xlane.f32.xlu0 %v779_v13  ;;  %786 = vadd.xlane.f32.xlu1 %v785_v51  ;;  %v806_v63 = vsel %vm775_vm2, %v769_v27, 0.0  ;;  %v815_v53 = vsel %vm775_vm2, %v772_v52, 0.0  ;;  %v812_v7 = vsel %vm775_vm2, %v771_v34, 0.0  ;;  %v773_v48 = vmul.f32 %v2801_v5, %v2801_v5 }
 0x18f   : > { %v821_v11 = vsel %vm775_vm2, %v774_v10, 0.0  ;;  %v1129_v16 = vlaneseq }
 0x190   : > { %v818_v14 = vsel %vm775_vm2, %v773_v48, 0.0 }
 0x192   : > { %792 = vadd.xlane.f32.xlu1 %v791_v47  ;;  %789 = vadd.xlane.f32.xlu0 %v788_v20 }
 0x196   : > { %798 = vadd.xlane.f32.xlu1 %v797_v0  ;;  %795 = vadd.xlane.f32.xlu0 %v794_v23 }
 0x19a   : > { %804 = vadd.xlane.f32.xlu1 %v803_v28  ;;  %801 = vadd.xlane.f32.xlu0 %v800_v29 }
 0x19e   : > { %810 = vadd.xlane.f32.xlu1 %v809_v39  ;;  %807 = vadd.xlane.f32.xlu0 %v806_v63 }
 0x1a2   : > { %816 = vadd.xlane.f32.xlu1 %v815_v53  ;;  %813 = vadd.xlane.f32.xlu0 %v812_v7 }
 0x1a6   : > { %822 = vadd.xlane.f32.xlu1 %v821_v11  ;;  %819 = vadd.xlane.f32.xlu0 %v818_v14 }
 0x217   : > { %v778_v18 = vpop.xlane.xlu0 %777  ;;  %v784_v19 = vpop.xlane.xlu1 %783 }
 0x218   : > { %v824_v58 = vmax.f32 %v778_v18, 1e-16  ;;  %v826_v24 = vmax.f32 %v784_v19, 1e-16 }
 0x21a   : > { %2098 = vrsqrt.f32 %v826_v24 }
 0x21b   : > { %v781_v59 = vpop.xlane.xlu0 %780  ;;  %v787_v25 = vpop.xlane.xlu1 %786  ;;  %2100 = vrsqrt.f32 %v824_v58 }
 0x21c   : > { %v825_v32 = vmax.f32 %v781_v59, 1e-16  ;;  %v827_v57 = vmax.f32 %v787_v25, 1e-16 }
 0x21e   : > { %2102 = vrsqrt.f32 %v825_v32 }
 0x21f   : > { %2104 = vrsqrt.f32 %v827_v57  ;;  %v793_v33 = vpop.xlane.xlu1 %792  ;;  %v790_v36 = vpop.xlane.xlu0 %789 }
 0x220   : > { %v829_v37 = vmax.f32 %v793_v33, 1e-16  ;;  %v828_v6 = vmax.f32 %v790_v36, 1e-16 }
 0x222   : > { %2106 = vrsqrt.f32 %v829_v37 }
 0x223   : > { %2108 = vrsqrt.f32 %v828_v6  ;;  %v799_v40 = vpop.xlane.xlu1 %798  ;;  %v796_v42 = vpop.xlane.xlu0 %795  ;;  %v874_v6 = vld [vmem:[#allocation2 + $0x10] sm:$0xff] }
 0x224   : > { %v2099_v43 = vpop.eup %2098  ;;  %v831_v8 = vmax.f32 %v799_v40, 1e-16  ;;  %v830_v1 = vmax.f32 %v796_v42, 1e-16  ;;  %v882_v40 = vld [vmem:[#allocation2 + $0x50] sm:$0xff]  ;;  %v875_v42 = vld [vmem:[#allocation2 + $0x18] sm:$0xff] }
 0x225   : > { %v2101_v44 = vpop.eup %2100  ;;  %v858_v50 = vmul.f32 %v2099_v43, %v2719_v41  ;;  %v883_v43 = vld [vmem:[#allocation2 + $0x58] sm:$0xff] }
 0x226   : > { %v856_v51 = vmul.f32 %v2101_v44, %v2716_v3  ;;  %2110 = vrsqrt.f32 %v831_v8  ;;  %v876_v8 = vld [vmem:[#allocation2 + $0x20] sm:$0xff] }
 0x227   : > { %2112 = vrsqrt.f32 %v830_v1  ;;  %v805_v20 = vpop.xlane.xlu1 %804  ;;  %v802_v21 = vpop.xlane.xlu0 %801  ;;  %v884_v44 = vld [vmem:[#allocation2 + $0x60] sm:$0xff]  ;;  %v877_v1 = vld [vmem:[#allocation2 + $0x28] sm:$0xff] }
 0x228   : > { %v2103_v12 = vpop.eup %2102  ;;  %v833_v3 = vmax.f32 %v805_v20, 1e-16  ;;  %v2917_v20 = vand.u32 127, %v1129_v16 }
 0x229   : > { %v2105_v13 = vpop.eup %2104  ;;  %v857_v46 = vmul.f32 %v2103_v12, %v2722_v4  ;;  %v832_v4 = vmax.f32 %v802_v21, 1e-16  ;;  %v885_v12 = vld [vmem:[#allocation2 + $0x68] sm:$0xff] }
 0x22a   : > { %v859_v47 = vmul.f32 %v2105_v13, %v2731_v45  ;;  %2114 = vrsqrt.f32 %v833_v3  ;;  %v886_v13 = vld [vmem:[#allocation2 + $0x70] sm:$0xff] }
 0x22b   : > { %v1925_v55 = vpack.c.bf16 %v857_v46, %v856_v51  ;;  %2116 = vrsqrt.f32 %v832_v4  ;;  %v811_v30 = vpop.xlane.xlu1 %810  ;;  %v808_v61 = vpop.xlane.xlu0 %807  ;;  %v879_v51 = vld [vmem:[#allocation2 + $0x38] sm:$0xff] }
 0x22c   : > { %v2107_v0 = vpop.eup %2106  ;;  %v1931_v41 = vpack.c.bf16 %v859_v47, %v858_v50  ;;  %v835_v39 = vmax.f32 %v811_v30, 1e-16  ;;  %v834_v63 = vmax.f32 %v808_v61, 1e-16  ;;  %v878_v50 = vld [vmem:[#allocation2 + $0x30] sm:$0xff]  ;;  %v887_v46 = vld [vmem:[#allocation2 + $0x78] sm:$0xff] }
 0x22d   : > { %v2109_v23 = vpop.eup %2108  ;;  %1927 = vmatprep.subr.msk.bf16.mxu0 %vm2818_vm3, %v1925_v55  ;;  %1973 = vmatprep.subr.msk.bf16.mxu1 %vm2818_vm3, %v1925_v55  ;;  %v861_v2 = vmul.f32 %v2107_v0, %v2736_v9  ;;  %v2913_v47 = vshrl.u32 %v1129_v16, 7 }
 0x22e   : > { %1930 = vmatpush3.bf16.xpose.msk.msra.mxu0 %vm2818_vm3, %v1925_v55  ;;  %1981 = vmatpush3.bf16.xpose.msk.msra.mxu1 %vm2818_vm3, %v1925_v55  ;;  %v860_v45 = vmul.f32 %v2109_v23, %v2739_v49  ;;  %2118 = vrsqrt.f32 %v835_v39  ;;  %v2923_v23 = vstv %s1166_s25 }
 0x22f   : > { %1933 = vmatprep.subr.msk.bf16.mxu0 %vm2818_vm3, %v1931_v41  ;;  %1974 = vmatprep.subr.msk.bf16.mxu1 %vm2818_vm3, %v1931_v41  ;;  %2120 = vrsqrt.f32 %v834_v63  ;;  %v817_v52 = vpop.xlane.xlu1 %816  ;;  %v814_v7 = vpop.xlane.xlu0 %813  ;;  %v1133_v55 = vadd.s32 8, %v2913_v47  ;;  %v1141_v21 = vadd.s32 72, %v2913_v47  ;;  %v1140_v0 = vadd.s32 64, %v2913_v47 }
 0x230   : > { %v2111_v28 = vpop.eup %2110  ;;  %v1937_v29 = vpack.c.bf16 %v861_v2, %v860_v45  ;;  %v837_v48 = vmax.f32 %v817_v52, 1e-16  ;;  %v836_v11 = vmax.f32 %v814_v7, 1e-16  ;;  %v1148_v3 = vsub.s32 %v2917_v20, %v2913_v47 }
 0x231   : > { %v2113_v27 = vpop.eup %2112  ;;  %v863_v49 = vmul.f32 %v2111_v28, %v2750_v54  ;;  %v1157_v4 = vsub.s32 %v2917_v20, %v1141_v21  ;;  %v1135_v45 = vadd.s32 24, %v2913_v47  ;;  %v1156_v2 = vsub.s32 %v2917_v20, %v1140_v0  ;;  %v3019_v0 = vld [vmem:[#allocation4] sm:$0xff] }
 0x232   : > { %v862_v9 = vmul.f32 %v2113_v27, %v2753_v17  ;;  %2122 = vrsqrt.f32 %v837_v48  ;;  %v1134_v30 = vadd.s32 16, %v2913_v47  ;;  %vm1168_vm5 = vcmp.eq.s32.totalorder %v1148_v3, %v2923_v23 }
 0x233   : > { %2124 = vrsqrt.f32 %v836_v11  ;;  %v823_v14 = vpop.xlane.xlu1 %822  ;;  %v820_v18 = vpop.xlane.xlu0 %819  ;;  %vm1177_vm6 = vcmp.eq.s32.totalorder %v1157_v4, %v2923_v23  ;;  %v1151_v61 = vsub.s32 %v2917_v20, %v1135_v45  ;;  %v1143_v27 = vadd.s32 88, %v2913_v47  ;;  %v3027_v45 = vld [vmem:[#allocation4 + $0x48] sm:$0xff] }
 0x234   : > { %v2115_v34 = vpop.eup %2114  ;;  %v1943_v53 = vpack.c.bf16 %v863_v49, %v862_v9  ;;  %v839_v58 = vmax.f32 %v823_v14, 1e-16  ;;  %v838_v24 = vmax.f32 %v820_v18, 1e-16  ;;  %vm1176_vm7 = vcmp.eq.s32.totalorder %v1156_v2, %v2923_v23 }
 0x235   : > { %v2117_v10 = vpop.eup %2116  ;;  %v865_v17 = vmul.f32 %v2115_v34, %v2762_v56  ;;  %v1150_v49 = vsub.s32 %v2917_v20, %v1134_v30  ;;  %v1142_v52 = vadd.s32 80, %v2913_v47  ;;  %vm1171_vm8 = vcmp.eq.s32.totalorder %v1151_v61, %v2923_v23  ;;  %v3034_v30 = vld [vmem:[#allocation4 + $0x40] sm:$0xff] }
 0x236   : > { %1936 = vmatpush3.bf16.xpose.msk.msra.mxu0 %vm2818_vm3, %v1931_v41  ;;  %1982 = vmatpush3.bf16.xpose.msk.msra.mxu1 %vm2818_vm3, %v1931_v41  ;;  %v864_v54 = vmul.f32 %v2117_v10, %v2765_v22  ;;  %2126 = vrsqrt.f32 %v839_v58  ;;  %v1149_v41 = vsub.s32 %v2917_v20, %v1133_v55  ;;  %v1159_v11 = vsub.s32 %v2917_v20, %v1143_v27 }
 0x237   : > { %1939 = vmatprep.subr.msk.bf16.mxu0 %vm2818_vm3, %v1937_v29  ;;  %1975 = vmatprep.subr.msk.bf16.mxu1 %vm2818_vm3, %v1937_v29  ;;  %2128 = vrsqrt.f32 %v838_v24  ;;  %vm1170_vm9 = vcmp.eq.s32.totalorder %v1150_v49, %v2923_v23 }
 0x238   : > { %v2119_v15 = vpop.eup %2118  ;;  %v1949_v26 = vpack.c.bf16 %v865_v17, %v864_v54  ;;  %vm1169_vm4 = vcmp.eq.s32.totalorder %v1149_v41, %v2923_v23  ;;  %v1137_v54 = vadd.s32 40, %v2913_v47  ;;  %vm1179_vm10 = vcmp.eq.s32.totalorder %v1159_v11, %v2923_v23 }
 0x239   : > { %v2121_v19 = vpop.eup %2120  ;;  %v867_v22 = vmul.f32 %v2119_v15, %v2774_v60  ;;  %v1158_v15 = vsub.s32 %v2917_v20, %v1142_v52  ;;  %v3053_v52 = vld [vmem:[#allocation4 + $0x10] sm:$0xff] }
 0x23a   : > { %v866_v56 = vmul.f32 %v2121_v19, %v2777_v31  ;;  %v1145_v19 = vadd.s32 104, %v2913_v47 }
 0x23b   : > { %vm1178_vm11 = vcmp.eq.s32.totalorder %v1158_v15, %v2923_v23 }
 0x23c   : > { %v2123_v59 = vpop.eup %2122  ;;  %v1955_v25 = vpack.c.bf16 %v867_v22, %v866_v56  ;;  %v1153_v56 = vsub.s32 %v2917_v20, %v1137_v54 }
 0x23d   : > { %v2125_v32 = vpop.eup %2124  ;;  %v869_v60 = vmul.f32 %v2123_v59, %v2786_v62 }
 0x23e   : > { %1942 = vmatpush3.bf16.xpose.msk.msra.mxu0 %vm2818_vm3, %v1937_v29  ;;  %1983 = vmatpush3.bf16.xpose.msk.msra.mxu1 %vm2818_vm3, %v1937_v29  ;;  %v868_v31 = vmul.f32 %v2125_v32, %v2789_v38  ;;  %vm1173_vm12 = vcmp.eq.s32.totalorder %v1153_v56, %v2923_v23 }
 0x23f   : > { %1945 = vmatprep.subr.msk.bf16.mxu0 %vm2818_vm3, %v1943_v53  ;;  %1976 = vmatprep.subr.msk.bf16.mxu1 %vm2818_vm3, %v1943_v53 }
 0x240   : > { %v2127_v57 = vpop.eup %2126  ;;  %v1961_v33 = vpack.c.bf16 %v869_v60, %v868_v31  ;;  %v1144_v31 = vadd.s32 96, %v2913_v47 }
 0x241   : > { %v2129_v36 = vpop.eup %2128  ;;  %v871_v38 = vmul.f32 %v2127_v57, %v2798_v35  ;;  %v873_v35 = vld [vmem:[#allocation2 + $0x8] sm:$0xff]  ;;  %v1161_v57 = vsub.s32 %v2917_v20, %v1145_v19 }
 0x242   : > { %v870_v37 = vmul.f32 %v2129_v36, %v2801_v5  ;;  %v881_v5 = vld [vmem:[#allocation2 + $0x48] sm:$0xff] }
 0x243   : > { %vm1181_vm14 = vcmp.eq.s32.totalorder %v1161_v57, %v2923_v23 }
 0x244   : > { %v1967_v62 = vpack.c.bf16 %v871_v38, %v870_v37  ;;  %v1139_v37 = vadd.s32 56, %v2913_v47 }
 0x246   : > { %1948 = vmatpush3.bf16.xpose.msk.msra.mxu0 %vm2818_vm3, %v1943_v53  ;;  %1984 = vmatpush3.bf16.xpose.msk.msra.mxu1 %vm2818_vm3, %v1943_v53 }
 0x247   : > { %1951 = vmatprep.subr.msk.bf16.mxu0 %vm2818_vm3, %v1949_v26  ;;  %1977 = vmatprep.subr.msk.bf16.mxu1 %vm2818_vm3, %v1949_v26 }
 0x24e   : > { %1954 = vmatpush3.bf16.xpose.msk.msra.mxu0 %vm2818_vm3, %v1949_v26  ;;  %1985 = vmatpush3.bf16.xpose.msk.msra.mxu1 %vm2818_vm3, %v1949_v26  ;;  %v1136_v26 = vadd.s32 32, %v2913_v47 }
 0x24f   : > { %1957 = vmatprep.subr.msk.bf16.mxu0 %vm2818_vm3, %v1955_v25  ;;  %1978 = vmatprep.subr.msk.bf16.mxu1 %vm2818_vm3, %v1955_v25 }
 0x256   : > { %1960 = vmatpush3.bf16.xpose.msk.msra.mxu0 %vm2818_vm3, %v1955_v25  ;;  %1986 = vmatpush3.bf16.xpose.msk.msra.mxu1 %vm2818_vm3, %v1955_v25  ;;  %v1152_v25 = vsub.s32 %v2917_v20, %v1136_v26  ;;  %v3073_v26 = vld [vmem:[#allocation4 + $0x50] sm:$0xff] }
 0x257   : > { %1963 = vmatprep.subr.msk.bf16.mxu0 %vm2818_vm3, %v1961_v33  ;;  %1979 = vmatprep.subr.msk.bf16.mxu1 %vm2818_vm3, %v1961_v33 }
 0x258   : > { %vm1172_vm13 = vcmp.eq.s32.totalorder %v1152_v25, %v2923_v23  ;;  %v3086_v25 = vld [vmem:[#allocation4 + $0x28] sm:$0xff] }
 0x25e   : > { %1966 = vmatpush3.bf16.xpose.msk.msra.mxu0 %vm2818_vm3, %v1961_v33  ;;  %1987 = vmatpush3.bf16.xpose.msk.msra.mxu1 %vm2818_vm3, %v1961_v33 }
 0x25f   : > { %1969 = vmatprep.subr.msk.bf16.mxu0 %vm2818_vm3, %v1967_v62  ;;  %1980 = vmatprep.subr.msk.bf16.mxu1 %vm2818_vm3, %v1967_v62 }
 0x266   : > { %1972 = vmatpush3.bf16.xpose.msk.msra.mxu0 %vm2818_vm3, %v1967_v62  ;;  %1988 = vmatpush3.bf16.xpose.msk.msra.mxu1 %vm2818_vm3, %v1967_v62  ;;  %v1160_v62 = vsub.s32 %v2917_v20, %v1144_v31  ;;  %v3093_v31 = vld [vmem:[#allocation4 + $0x20] sm:$0xff] }
 0x268   : > { %vm1180_vm15 = vcmp.eq.s32.totalorder %v1160_v62, %v2923_v23  ;;  %v3103_v62 = vld [vmem:[#allocation4 + $0x68] sm:$0xff] }
 0x26d   : > { %1902 = vmatmul.mubr.msk.f32.vlgmr.msra.gmra.mrb[0].mxu0 %vm775_vm2, %v873_v35  ;;  %1914 = vmatmul.mubr.msk.f32.vlgmr.msra.gmra.mrb[0].mxu1 %vm775_vm2, %v881_v5  ;;  %v1138_v5 = vadd.s32 48, %v2913_v47 }
 0x26e   : > { %1904 = vmatprep.mubr.msk.f32.mxu0 %vm775_vm2, %v874_v6  ;;  %1916 = vmatprep.mubr.msk.f32.mxu1 %vm775_vm2, %v882_v40 }
 0x271   : > { %1905 = vmatmul.mubr.msk.f32.gmra.mrb[2].mxu0 %vm775_vm2, %v875_v42  ;;  %1917 = vmatmul.mubr.msk.f32.gmra.mrb[2].mxu1 %vm775_vm2, %v883_v43  ;;  %v1155_v43 = vsub.s32 %v2917_v20, %v1139_v37 }
 0x272   : > { %1907 = vmatprep.mubr.msk.f32.mxu0 %vm775_vm2, %v876_v8  ;;  %1919 = vmatprep.mubr.msk.f32.mxu1 %vm775_vm2, %v884_v44  ;;  %v1147_v8 = vadd.s32 120, %v2913_v47  ;;  %v1154_v44 = vsub.s32 %v2917_v20, %v1138_v5 }
 0x273   : > { %vm1175_vm0 = vcmp.eq.s32.totalorder %v1155_v43, %v2923_v23 }
 0x274   : > { %vm1174_vm1 = vcmp.eq.s32.totalorder %v1154_v44, %v2923_v23 }
 0x275   : > { %1908 = vmatmul.mubr.msk.f32.gmra.mrb[4].mxu0 %vm775_vm2, %v877_v1  ;;  %1920 = vmatmul.mubr.msk.f32.gmra.mrb[4].mxu1 %vm775_vm2, %v885_v12  ;;  %v1146_v1 = vadd.s32 112, %v2913_v47  ;;  %v2268_v12 = vmov 0  }
 0x276   : > { %1910 = vmatprep.mubr.msk.f32.mxu0 %vm775_vm2, %v878_v50  ;;  %1922 = vmatprep.mubr.msk.f32.mxu1 %vm775_vm2, %v886_v13 }
 0x277   : > { %2096 = vset.pattern.permute.xlu1 %v2268_v12  ;;  %2097 = vset.pattern.permute.xlu0 %v2268_v12  ;;  %v3122_v12 = vld [vmem:[#allocation4 + $0x38] sm:$0xff] }
 0x279   : > { %1911 = vmatmul.mubr.msk.f32.gmra.mrb[6].mxu0 %vm775_vm2, %v879_v51  ;;  %1923 = vmatmul.mubr.msk.f32.gmra.mrb[6].mxu1 %vm775_vm2, %v887_v46  ;;  %v1163_v51 = vsub.s32 %v2917_v20, %v1147_v8  ;;  %v1162_v46 = vsub.s32 %v2917_v20, %v1146_v1  ;;  %v3017_v20 = vld [vmem:[#allocation4 + $0x8] sm:$0xff] }
 0x27b   : > { %vm1183_vm2 = vcmp.eq.s32.totalorder %v1163_v51, %v2923_v23  ;;  %vm1182_vm3 = vcmp.eq.s32.totalorder %v1162_v46, %v2923_v23 }
 0x340   : > { %v1903_v28 = vpop.f32.mrb[0].mxu0  ;;  %v1915_v29 = vpop.f32.mrb[0].mxu1 }
 0x341   : > { %v1050_v39 = vpop.f32.mrb[1].mxu0  ;;  %v2936_v63 = vsel %vm1169_vm4, -1e+30, %v1903_v28  ;;  %v1090_v9 = vpop.f32.mrb[1].mxu1  ;;  %v2945_v53 = vsel %vm1177_vm6, -1e+30, %v1915_v29 }
 0x342   : > { %1218 = vmax.xlane.f32.xlu1 %v2936_v63  ;;  %v2942_v34 = vsel %vm1168_vm5, -1e+30, %v1050_v39  ;;  %v2947_v7 = vsel %vm1176_vm7, -1e+30, %v1090_v9  ;;  %vm1520_vm4 = vcmask 7168   ;;  %v3046_v9 = vld [vmem:[#allocation4 + $0x18] sm:$0xff] }
 0x343   : > { %1216 = vmax.xlane.f32.xlu0 %v2942_v34 }
 0x344   : > { %v1906_v10 = vpop.f32.mrb[2].mxu0  ;;  %v1918_v48 = vpop.f32.mrb[2].mxu1 }
 0x345   : > { %v1060_v17 = vpop.f32.mrb[3].mxu0  ;;  %v1100_v14 = vpop.f32.mrb[3].mxu1  ;;  %v2957_v18 = vsel %vm1171_vm8, -1e+30, %v1906_v10  ;;  %v2969_v60 = vsel %vm1179_vm10, -1e+30, %v1918_v48 }
 0x346   : > { %1234 = vmax.xlane.f32.xlu1 %v2945_v53  ;;  %v2960_v58 = vsel %vm1170_vm9, -1e+30, %v1060_v17  ;;  %v2972_v33 = vsel %vm1178_vm11, -1e+30, %v1100_v14  ;;  %v3066_v14 = vld [vmem:[#allocation4 + $0x58] sm:$0xff] }
 0x347   : > { %1232 = vmax.xlane.f32.xlu0 %v2947_v7 }
 0x348   : > { %v1909_v24 = vpop.f32.mrb[4].mxu0  ;;  %v1921_v22 = vpop.f32.mrb[4].mxu1 }
 0x349   : > { %v1070_v59 = vpop.f32.mrb[5].mxu0  ;;  %v1110_v32 = vpop.f32.mrb[5].mxu1  ;;  %v2981_v40 = vsel %vm1173_vm12, -1e+30, %v1909_v24  ;;  %v2992_v50 = vsel %vm1181_vm14, -1e+30, %v1921_v22 }
 0x34a   : > { %1222 = vmax.xlane.f32.xlu1 %v2957_v18  ;;  %v2984_v42 = vsel %vm1172_vm13, -1e+30, %v1070_v59  ;;  %v2996_v13 = vsel %vm1180_vm15, -1e+30, %v1110_v32 }
 0x34b   : > { %1220 = vmax.xlane.f32.xlu0 %v2960_v58 }
 0x34c   : > { %v1912_v36 = vpop.f32.mrb[6].mxu0  ;;  %v1924_v38 = vpop.f32.mrb[6].mxu1 }
 0x34d   : > { %v1080_v35 = vpop.f32.mrb[7].mxu0  ;;  %v1120_v6 = vpop.f32.mrb[7].mxu1  ;;  %v3002_v16 = vsel %vm1175_vm0, -1e+30, %v1912_v36  ;;  %v3010_v55 = vsel %vm1183_vm2, -1e+30, %v1924_v38 }
 0x34e   : > { %1238 = vmax.xlane.f32.xlu1 %v2969_v60  ;;  %v3006_v47 = vsel %vm1174_vm1, -1e+30, %v1080_v35  ;;  %v3013_v21 = vsel %vm1182_vm3, -1e+30, %v1120_v6  ;;  %v3112_v6 = vld [vmem:[#allocation4 + $0x60] sm:$0xff] }
 0x34f   : > { %1236 = vmax.xlane.f32.xlu0 %v2972_v33 }
 0x352   : > { %1226 = vmax.xlane.f32.xlu1 %v2981_v40 }
 0x353   : > { %1224 = vmax.xlane.f32.xlu0 %v2984_v42 }
 0x356   : > { %1242 = vmax.xlane.f32.xlu1 %v2992_v50 }
 0x357   : > { %1240 = vmax.xlane.f32.xlu0 %v2996_v13 }
 0x35a   : > { %1230 = vmax.xlane.f32.xlu1 %v3002_v16 }
 0x35b   : > { %1228 = vmax.xlane.f32.xlu0 %v3006_v47 }
 0x35e   : > { %1246 = vmax.xlane.f32.xlu1 %v3010_v55 }
 0x35f   : > { %1244 = vmax.xlane.f32.xlu0 %v3013_v21 }
 0x3cf   : > { %v1219_v41 = vpop.xlane.xlu1 %1218 }
 0x3d0   : > { %v3022_v23 = vmax.f32 %v3017_v20, %v1219_v41  ;;  %v1217_v3 = vpop.xlane.xlu0 %1216  ;;  %v3132_v41 = vld [vmem:[#allocation4 + $0x30] sm:$0xff] }
 0x3d1   : > { %v3025_v4 = vmax.f32 %v3019_v0, %v1217_v3 }
 0x3d2   : > { %v1393_v2 = vsub.f32 %v3017_v20, %v3022_v23  ;;  %1538 = vst.msk [vmem:[#allocation4 + $0x8] sm:$0xff] %vm1520_vm4, %v3022_v23  ;;  %1271 = vperm.xlu1 %2096, %v3022_v23  }
 0x3d3   : > { %1537 = vst.msk [vmem:[#allocation4] sm:$0xff] %vm1520_vm4, %v3025_v4  ;;  %v1235_v29 = vpop.xlane.xlu1 %1234 }
 0x3d4   : > { %v3041_v61 = vmax.f32 %v3027_v45, %v1235_v29  ;;  %v1233_v27 = vpop.xlane.xlu0 %1232 }
 0x3d5   : > { %v3044_v39 = vmax.f32 %v3034_v30, %v1233_v27 }
 0x3d6   : > { %v1401_v49 = vsub.f32 %v3027_v45, %v3041_v61  ;;  %1546 = vst.msk [vmem:[#allocation4 + $0x48] sm:$0xff] %vm1520_vm4, %v3041_v61  ;;  %1311 = vperm.xlu0 %2097, %v3041_v61  }
 0x3d7   : > { %1545 = vst.msk [vmem:[#allocation4 + $0x40] sm:$0xff] %vm1520_vm4, %v3044_v39  ;;  %v1223_v48 = vpop.xlane.xlu1 %1222  ;;  %1306 = vperm.xlu1 %2096, %v3044_v39  }
 0x3d8   : > { %v3061_v11 = vmax.f32 %v3046_v9, %v1223_v48  ;;  %v1221_v54 = vpop.xlane.xlu0 %1220 }
 0x3d9   : > { %v3064_v17 = vmax.f32 %v3053_v52, %v1221_v54  ;;  %v3142_v54 = vld [vmem:[#allocation4 + $0x78] sm:$0xff] }
 0x3da   : > { %1540 = vst.msk [vmem:[#allocation4 + $0x18] sm:$0xff] %vm1520_vm4, %v3061_v11  ;;  %1266 = vperm.xlu0 %2097, %v3025_v4   ;;  %v3313_v20 = vsub.f32 %v3046_v9, %v3061_v11 }
 0x3db   : > { %1539 = vst.msk [vmem:[#allocation4 + $0x10] sm:$0xff] %vm1520_vm4, %v3064_v17  ;;  %v1239_v24 = vpop.xlane.xlu1 %1238  ;;  %1281 = vperm.xlu1 %2096, %v3061_v11   ;;  %v1449_v11 = vld [vmem:[#allocation5 + $0x48] sm:$0xff] }
 0x3dc   : > { %v3081_v56 = vmax.f32 %v3066_v14, %v1239_v24  ;;  %v1237_v22 = vpop.xlane.xlu0 %1236  ;;  %v1414_v23 = vmul.f32 1.442695, %v3313_v20 }
 0x3dd   : > { %v3084_v59 = vmax.f32 %v3073_v26, %v1237_v22 }
 0x3de   : > { %1548 = vst.msk [vmem:[#allocation4 + $0x58] sm:$0xff] %vm1520_vm4, %v3081_v56  ;;  %1321 = vperm.xlu0 %2097, %v3081_v56  }
 0x3df   : > { %1547 = vst.msk [vmem:[#allocation4 + $0x50] sm:$0xff] %vm1520_vm4, %v3084_v59  ;;  %v1227_v36 = vpop.xlane.xlu1 %1226  ;;  %1276 = vperm.xlu1 %2096, %v3064_v17  }
 0x3e0   : > { %v3101_v37 = vmax.f32 %v3086_v25, %v1227_v36  ;;  %v1225_v38 = vpop.xlane.xlu0 %1224  ;;  %v3151_v36 = vld [vmem:[#allocation4 + $0x70] sm:$0xff] }
 0x3e1   : > { %v3106_v35 = vmax.f32 %v3093_v31, %v1225_v38 }
 0x3e2   : > { %1542 = vst.msk [vmem:[#allocation4 + $0x28] sm:$0xff] %vm1520_vm4, %v3101_v37 }
 0x3e3   : > { %v1243_v43 = vpop.xlane.xlu1 %1242  ;;  %1316 = vperm.xlu1 %2096, %v3084_v59   ;;  %1541 = vst.msk [vmem:[#allocation4 + $0x20] sm:$0xff] %vm1520_vm4, %v3106_v35 }
 0x3e4   : > { %v3120_v44 = vmax.f32 %v3103_v62, %v1243_v43  ;;  %v1241_v1 = vpop.xlane.xlu0 %1240 }
 0x3e5   : > { %v3125_v51 = vmax.f32 %v3112_v6, %v1241_v1 }
 0x3e6   : > { %1550 = vst.msk [vmem:[#allocation4 + $0x68] sm:$0xff] %vm1520_vm4, %v3120_v44  ;;  %1331 = vperm.xlu0 %2097, %v3120_v44  }
 0x3e7   : > { %1291 = vperm.xlu1 %2096, %v3101_v37   ;;  %v1231_v3 = vpop.xlane.xlu1 %1230  ;;  %1549 = vst.msk [vmem:[#allocation4 + $0x60] sm:$0xff] %vm1520_vm4, %v3125_v51 }
 0x3e8   : > { %v3140_v27 = vmax.f32 %v3122_v12, %v1231_v3  ;;  %v1229_v48 = vpop.xlane.xlu0 %1228 }
 0x3e9   : > { %v3145_v24 = vmax.f32 %v3132_v41, %v1229_v48 }
 0x3ea   : > { %1544 = vst.msk [vmem:[#allocation4 + $0x38] sm:$0xff] %vm1520_vm4, %v3140_v27 }
 0x3eb   : > { %1286 = vperm.xlu1 %2096, %v3106_v35   ;;  %v1247_v38 = vpop.xlane.xlu1 %1246  ;;  %1543 = vst.msk [vmem:[#allocation4 + $0x30] sm:$0xff] %vm1520_vm4, %v3145_v24 }
 0x3ec   : > { %v3159_v1 = vmax.f32 %v3142_v54, %v1247_v38  ;;  %v1245_v3 = vpop.xlane.xlu0 %1244 }
 0x3ed   : > { %v3162_v48 = vmax.f32 %v3151_v36, %v1245_v3 }
 0x3ee   : > { %1552 = vst.msk [vmem:[#allocation4 + $0x78] sm:$0xff] %vm1520_vm4, %v3159_v1  ;;  %1341 = vperm.xlu0 %2097, %v3159_v1  }
 0x3ef   : > { %1326 = vperm.xlu1 %2096, %v3125_v51   ;;  %1551 = vst.msk [vmem:[#allocation4 + $0x70] sm:$0xff] %vm1520_vm4, %v3162_v48 }
 0x3f3   : > { %1301 = vperm.xlu1 %2096, %v3140_v27  }
 0x3f7   : > { %1296 = vperm.xlu1 %2096, %v3145_v24  }
 0x3fb   : > { %1336 = vperm.xlu1 %2096, %v3162_v48  }
 0x451   : > { %v1272_v38 = vpop.permute.xlu1 %1271 }
 0x452   : > { %v1345_v3 = vsub.f32 %v2936_v63, %v1272_v38 }
 0x454   : > { %v1362_v22 = vmul.f32 1.442695, %v1345_v3 }
 0x455   : > { %v1312_v29 = vpop.permute.xlu0 %1311 }
 0x456   : > { %2130 = vpow2.f32 %v1362_v22  ;;  %v1353_v46 = vsub.f32 %v2945_v53, %v1312_v29  ;;  %v1307_v8 = vpop.permute.xlu1 %1306 }
 0x457   : > { %v1352_v43 = vsub.f32 %v2947_v7, %v1307_v8 }
 0x458   : > { %v1378_v5 = vmul.f32 1.442695, %v1353_v46 }
 0x459   : > { %v1376_v57 = vmul.f32 1.442695, %v1352_v43  ;;  %v1267_v32 = vpop.permute.xlu0 %1266 }
 0x45a   : > { %2132 = vpow2.f32 %v1378_v5  ;;  %v1344_v19 = vsub.f32 %v2942_v34, %v1267_v32  ;;  %v1282_v15 = vpop.permute.xlu1 %1281 }
 0x45b   : > { %2134 = vpow2.f32 %v1376_v57  ;;  %v1347_v28 = vsub.f32 %v2957_v18, %v1282_v15 }
 0x45c   : > { %v1360_v10 = vmul.f32 1.442695, %v1344_v19 }
 0x45d   : > { %v1322_v63 = vpop.permute.xlu0 %1321  ;;  %v1366_v38 = vmul.f32 1.442695, %v1347_v28 }
 0x45e   : > { %2136 = vpow2.f32 %v1360_v10  ;;  %v1355_v22 = vsub.f32 %v2969_v60, %v1322_v63  ;;  %v1277_v53 = vpop.permute.xlu1 %1276 }
 0x45f   : > { %v1346_v29 = vsub.f32 %v2960_v58, %v1277_v53  ;;  %2138 = vpow2.f32 %v1366_v38 }
 0x460   : > { %v2131_v7 = vpop.eup %2130  ;;  %v1382_v5 = vmul.f32 1.442695, %v1355_v22 }
 0x461   : > { %v1364_v8 = vmul.f32 1.442695, %v1346_v29  ;;  %1474 = vadd.xlane.f32.xlu0 %v2131_v7 }
 0x462   : > { %v1317_v46 = vpop.permute.xlu1 %1316 }
 0x463   : > { %2140 = vpow2.f32 %v1364_v8  ;;  %v1354_v34 = vsub.f32 %v2972_v33, %v1317_v46 }
 0x464   : > { %v2133_v32 = vpop.eup %2132  ;;  %2142 = vpow2.f32 %v1382_v5 }
 0x465   : > { %v2135_v18 = vpop.eup %2134  ;;  %v1380_v15 = vmul.f32 1.442695, %v1354_v34  ;;  %1490 = vadd.xlane.f32.xlu1 %v2133_v32  ;;  %v1332_v10 = vpop.permute.xlu0 %1331 }
 0x466   : > { %v1357_v60 = vsub.f32 %v2992_v50, %v1332_v10  ;;  %v1292_v28 = vpop.permute.xlu1 %1291  ;;  %1488 = vadd.xlane.f32.xlu0 %v2135_v18 }
 0x467   : > { %2144 = vpow2.f32 %v1380_v15  ;;  %v1349_v58 = vsub.f32 %v2981_v40, %v1292_v28 }
 0x468   : > { %v2137_v19 = vpop.eup %2136  ;;  %v1386_v43 = vmul.f32 1.442695, %v1357_v60 }
 0x469   : > { %v1370_v57 = vmul.f32 1.442695, %v1349_v58  ;;  %1472 = vadd.xlane.f32.xlu1 %v2137_v19  ;;  %v2139_v63 = vpop.eup %2138 }
 0x46a   : > { %v1287_v3 = vpop.permute.xlu1 %1286 }
 0x46b   : > { %2146 = vpow2.f32 %v1370_v57  ;;  %v1348_v33 = vsub.f32 %v2984_v42, %v1287_v3 }
 0x46c   : > { %2148 = vpow2.f32 %v1386_v43 }
 0x46d   : > { %v2141_v38 = vpop.eup %2140  ;;  %v1368_v22 = vmul.f32 1.442695, %v1348_v33  ;;  %1478 = vadd.xlane.f32.xlu1 %v2139_v63  ;;  %v1342_v50 = vpop.permute.xlu0 %1341  ;;  %v1410_v33 = vmul.f32 1.442695, %v1393_v2  ;;  %v3311_v63 = vsub.f32 %v3034_v30, %v3044_v39  ;;  %v3314_v2 = vsub.f32 %v3053_v52, %v3064_v17  ;;  %v1448_v52 = vld [vmem:[#allocation5 + $0x40] sm:$0xff] }
 0x46e   : > { %v1327_v53 = vpop.permute.xlu1 %1326  ;;  %1476 = vadd.xlane.f32.xlu0 %v2141_v38  ;;  %v2143_v40 = vpop.eup %2142  ;;  %v1359_v5 = vsub.f32 %v3010_v55, %v1342_v50  ;;  %v3315_v30 = vsub.f32 %v3066_v14, %v3081_v56  ;;  %v3317_v17 = vsub.f32 %v3086_v25, %v3101_v37 }
 0x46f   : > { %2150 = vpow2.f32 %v1368_v22  ;;  %v1356_v29 = vsub.f32 %v2996_v13, %v1327_v53  ;;  %v1424_v38 = vmul.f32 1.442695, %v3311_v63  ;;  %v3312_v22 = vsub.f32 %v3019_v0, %v3025_v4 }
 0x470   : > { %v1390_v18 = vmul.f32 1.442695, %v1359_v5  ;;  %v1412_v45 = vmul.f32 1.442695, %v3314_v2  ;;  %v1430_v39 = vmul.f32 1.442695, %v3315_v30  ;;  %v3316_v0 = vsub.f32 %v3073_v26, %v3084_v59 }
 0x471   : > { %v2145_v7 = vpop.eup %2144  ;;  %v1384_v8 = vmul.f32 1.442695, %v1356_v29  ;;  %1494 = vadd.xlane.f32.xlu1 %v2143_v40  ;;  %v1408_v53 = vmul.f32 1.442695, %v3312_v22  ;;  %v1440_v59 = vld [vmem:[#allocation5] sm:$0xff]  ;;  %v3321_v63 = vsub.f32 %v3122_v12, %v3140_v27  ;;  %v1445_v2 = vld [vmem:[#allocation5 + $0x28] sm:$0xff]  ;;  %v3323_v12 = vsub.f32 %v3142_v54, %v3159_v1 }
 0x472   : > { %v1302_v46 = vpop.permute.xlu1 %1301  ;;  %1492 = vadd.xlane.f32.xlu0 %v2145_v7  ;;  %v1428_v4 = vmul.f32 1.442695, %v3316_v0 }
 0x473   : > { %2152 = vpow2.f32 %v1384_v8  ;;  %v1351_v42 = vsub.f32 %v3002_v16, %v1302_v46  ;;  %v1418_v8 = vmul.f32 1.442695, %v3317_v17  ;;  %v1438_v27 = vmul.f32 1.442695, %v3323_v12 }
 0x475   : > { %v2147_v34 = vpop.eup %2146  ;;  %v1374_v32 = vmul.f32 1.442695, %v1351_v42 }
 0x476   : > { %v1297_v15 = vpop.permute.xlu1 %1296  ;;  %1482 = vadd.xlane.f32.xlu1 %v2147_v34  ;;  %v2149_v13 = vpop.eup %2148  ;;  %v3318_v34 = vsub.f32 %v3093_v31, %v3106_v35  ;;  %v3320_v31 = vsub.f32 %v3112_v6, %v3125_v51 }
 0x477   : > { %2154 = vpow2.f32 %v1374_v32  ;;  %v1350_v10 = vsub.f32 %v3006_v47, %v1297_v15  ;;  %v3319_v15 = vsub.f32 %v3103_v62, %v3120_v44 }
 0x478   : > { %2156 = vpow2.f32 %v1390_v18  ;;  %v1416_v32 = vmul.f32 1.442695, %v3318_v34  ;;  %v1432_v35 = vmul.f32 1.442695, %v3320_v31  ;;  %v1455_v34 = vld [vmem:[#allocation5 + $0x78] sm:$0xff] }
 0x479   : > { %v2151_v60 = vpop.eup %2150  ;;  %v1372_v28 = vmul.f32 1.442695, %v1350_v10  ;;  %v1434_v25 = vmul.f32 1.442695, %v3319_v15 }
 0x47a   : > { %1480 = vadd.xlane.f32.xlu0 %v2151_v60  ;;  %v1337_v58 = vpop.permute.xlu1 %1336  ;;  %1498 = vadd.xlane.f32.xlu1 %v2149_v13  ;;  %v1443_v60 = vld [vmem:[#allocation5 + $0x18] sm:$0xff] }
 0x47b   : > { %2158 = vpow2.f32 %v1372_v28  ;;  %v1358_v55 = vsub.f32 %v3013_v21, %v1337_v58  ;;  %v1426_v21 = vmul.f32 1.442695, %v1401_v49  ;;  %v1441_v49 = vld [vmem:[#allocation5 + $0x8] sm:$0xff] }
 0x47d   : > { %v2153_v19 = vpop.eup %2152  ;;  %v1388_v16 = vmul.f32 1.442695, %v1358_v55  ;;  %v1442_v55 = vld [vmem:[#allocation5 + $0x10] sm:$0xff] }
 0x47e   : > { %1496 = vadd.xlane.f32.xlu0 %v2153_v19 }
 0x47f   : > { %2160 = vpow2.f32 %v1388_v16 }
 0x480   : > { %2162 = vpow2.f32 %v1410_v33  ;;  %v1450_v33 = vld [vmem:[#allocation5 + $0x50] sm:$0xff] }
 0x481   : > { %v2155_v57 = vpop.eup %2154  ;;  %2164 = vpow2.f32 %v1426_v21 }
 0x482   : > { %1486 = vadd.xlane.f32.xlu1 %v2155_v57  ;;  %v2157_v43 = vpop.eup %2156  ;;  %2166 = vpow2.f32 %v1424_v38  ;;  %v1451_v57 = vld [vmem:[#allocation5 + $0x58] sm:$0xff]  ;;  %v1422_v38 = vmul.f32 1.442695, %v3321_v63 }
 0x483   : > { %2168 = vpow2.f32 %v1408_v53 }
 0x484   : > { %2170 = vpow2.f32 %v1414_v23 }
 0x485   : > { %v2159_v3 = vpop.eup %2158  ;;  %2172 = vpow2.f32 %v1412_v45  ;;  %v3322_v45 = vsub.f32 %v3132_v41, %v3145_v24  ;;  %v3324_v41 = vsub.f32 %v3151_v36, %v3162_v48  ;;  %v1447_v36 = vld [vmem:[#allocation5 + $0x38] sm:$0xff] }
 0x486   : > { %1484 = vadd.xlane.f32.xlu0 %v2159_v3  ;;  %1502 = vadd.xlane.f32.xlu1 %v2157_v43  ;;  %2174 = vpow2.f32 %v1430_v39 }
 0x487   : > { %2176 = vpow2.f32 %v1428_v4  ;;  %v1436_v24 = vmul.f32 1.442695, %v3324_v41  ;;  %v1639_v41 = vld [vmem:[#allocation3 + $0x10] sm:$0xff] (!%p1834_p11) }
 0x488   : > { %2178 = vpow2.f32 %v1418_v8 }
 0x489   : > { %v2161_v47 = vpop.eup %2160  ;;  %2180 = vpow2.f32 %v1416_v32  ;;  %v1446_v32 = vld [vmem:[#allocation5 + $0x30] sm:$0xff] }
 0x48a   : > { %1500 = vadd.xlane.f32.xlu0 %v2161_v47  ;;  %v2163_v61 = vpop.eup %2162  ;;  %2182 = vpow2.f32 %v1434_v25 }
 0x48b   : > { %v1457_v50 = vmul.f32 %v2163_v61, %v1441_v49  ;;  %v2165_v29 = vpop.eup %2164  ;;  %2184 = vpow2.f32 %v1432_v35  ;;  %v1420_v61 = vmul.f32 1.442695, %v3322_v45  ;;  %v1637_v45 = vld [vmem:[#allocation3] sm:$0xff] (!%p1834_p11) }
 0x48c   : > { %v2167_v40 = vpop.eup %2166  ;;  %v1465_v14 = vmul.f32 %v2165_v29, %v1449_v11  ;;  %2186 = vpow2.f32 %v1422_v38  ;;  %v1444_v29 = vld [vmem:[#allocation5 + $0x20] sm:$0xff] }
 0x48d   : > { %v2169_v56 = vpop.eup %2168  ;;  %v1464_v26 = vmul.f32 %v2167_v40, %v1448_v52  ;;  %2188 = vpow2.f32 %v1420_v61  ;;  %v1452_v52 = vld [vmem:[#allocation5 + $0x60] sm:$0xff] }
 0x48e   : > { %v1456_v37 = vmul.f32 %v2169_v56, %v1440_v59  ;;  %v2171_v10 = vpop.eup %2170  ;;  %2190 = vpow2.f32 %v1438_v27 }
 0x48f   : > { %v2173_v28 = vpop.eup %2172  ;;  %v1459_v62 = vmul.f32 %v2171_v10, %v1443_v60  ;;  %2192 = vpow2.f32 %v1436_v24  ;;  %v1454_v60 = vld [vmem:[#allocation5 + $0x70] sm:$0xff] }
 0x490   : > { %v2175_v44 = vpop.eup %2174  ;;  %v1458_v16 = vmul.f32 %v2173_v28, %v1442_v55 }
 0x491   : > { %v2177_v43 = vpop.eup %2176  ;;  %v1467_v6 = vmul.f32 %v2175_v44, %v1451_v57 }
 0x492   : > { %v1466_v22 = vmul.f32 %v2177_v43, %v1450_v33  ;;  %v2179_v53 = vpop.eup %2178 }
 0x493   : > { %v2181_v30 = vpop.eup %2180  ;;  %v1461_v39 = vmul.f32 %v2179_v53, %v1445_v2 }
 0x494   : > { %v2183_v0 = vpop.eup %2182  ;;  %v1460_v1 = vmul.f32 %v2181_v30, %v1444_v29 }
 0x495   : > { %v2185_v11 = vpop.eup %2184 }
 0x496   : > { %v2187_v56 = vpop.eup %2186 }
 0x497   : > { %v1463_v59 = vmul.f32 %v2187_v56, %v1447_v36  ;;  %v1641_v36 = vld [vmem:[#allocation3 + $0x20] sm:$0xff] (!%p1834_p11) }
 0x4ee   : > { %v1475_v9 = vpop.xlane.xlu0 %1474 }
 0x4ef   : > { %v1505_v7 = vadd.f32 %v1475_v9, %v1457_v50  ;;  %v1453_v50 = vld [vmem:[#allocation5 + $0x68] sm:$0xff] }
 0x4f0   : > { %v1469_v54 = vmul.f32 %v2183_v0, %v1453_v50 }
 0x4f1   : > { %1522 = vst.msk [vmem:[#allocation5 + $0x8] sm:$0xff] %vm1520_vm4, %v1505_v7 }
 0x4f2   : > { %v1491_v5 = vpop.xlane.xlu1 %1490 }
 0x4f3   : > { %v1513_v46 = vadd.f32 %v1491_v5, %v1465_v14  ;;  %v1489_v42 = vpop.xlane.xlu0 %1488  ;;  %v1468_v14 = vmul.f32 %v2185_v11, %v1452_v52  ;;  %v1640_v52 = vld [vmem:[#allocation3 + $0x18] sm:$0xff] (!%p1834_p11) }
 0x4f4   : > { %v1512_v18 = vadd.f32 %v1489_v42, %v1464_v26  ;;  %v2189_v26 = vpop.eup %2188 }
 0x4f5   : > { %1530 = vst.msk [vmem:[#allocation5 + $0x48] sm:$0xff] %vm1520_vm4, %v1513_v46  ;;  %v2191_v46 = vpop.eup %2190  ;;  %v1462_v25 = vmul.f32 %v2189_v26, %v1446_v32  ;;  %v1563_v26 = vld [vmem:[#allocation4 + $0x30] sm:$0xff] (!%p1834_p11) }
 0x4f6   : > { %1529 = vst.msk [vmem:[#allocation5 + $0x40] sm:$0xff] %vm1520_vm4, %v1512_v18  ;;  %v1473_v13 = vpop.xlane.xlu1 %1472  ;;  %v1471_v15 = vmul.f32 %v2191_v46, %v1455_v34  ;;  %v1642_v34 = vld [vmem:[#allocation3 + $0x28] sm:$0xff] (!%p1834_p11) }
 0x4f7   : > { %v1504_v58 = vadd.f32 %v1473_v13, %v1456_v37  ;;  %v2193_v37 = vpop.eup %2192 }
 0x4f8   : > { %v1470_v55 = vmul.f32 %v2193_v37, %v1454_v60  ;;  %v1574_v44 = vld [vmem:[#allocation5 + $0x8] sm:$0xff] (!%p1834_p11)  ;;  %v1565_v60 = vld [vmem:[#allocation4 + $0x40] sm:$0xff] (!%p1834_p11) }
 0x4f9   : > { %1521 = vst.msk [vmem:[#allocation5] sm:$0xff] %vm1520_vm4, %v1504_v58 }
 0x4fa   : > { %v1479_v19 = vpop.xlane.xlu1 %1478 }
 0x4fb   : > { %v1507_v3 = vadd.f32 %v1479_v19, %v1459_v62  ;;  %v1477_v47 = vpop.xlane.xlu0 %1476 }
 0x4fc   : > { %v1506_v21 = vadd.f32 %v1477_v47, %v1458_v16 }
 0x4fd   : > { %1524 = vst.msk [vmem:[#allocation5 + $0x18] sm:$0xff] %vm1520_vm4, %v1507_v3  ;;  %v1581_v33 = vld [vmem:[#allocation5 + $0x40] sm:$0xff] (!%p1834_p11) }
 0x4fe   : > { %1523 = vst.msk [vmem:[#allocation5 + $0x10] sm:$0xff] %vm1520_vm4, %v1506_v21  ;;  %v1495_v51 = vpop.xlane.xlu1 %1494  ;;  %v1582_v21 = vld [vmem:[#allocation5 + $0x48] sm:$0xff] (!%p1834_p11) }
 0x4ff   : > { %v1515_v20 = vadd.f32 %v1495_v51, %v1467_v6  ;;  %v1493_v23 = vpop.xlane.xlu0 %1492  ;;  %v1557_v6 = vld [vmem:[#allocation4] sm:$0xff] (!%p1834_p11) }
 0x500   : > { %v1514_v49 = vadd.f32 %v1493_v23, %v1466_v22  ;;  %v1573_v62 = vld [vmem:[#allocation5] sm:$0xff] (!%p1834_p11) }
 0x501   : > { %1532 = vst.msk [vmem:[#allocation5 + $0x58] sm:$0xff] %vm1520_vm4, %v1515_v20  ;;  %2194 = vlog2.f32 (!%p1834_p11), %v1573_v62  ;;  %v1558_v20 = vld [vmem:[#allocation4 + $0x8] sm:$0xff] (!%p1834_p11) }
 0x502   : > { %1531 = vst.msk [vmem:[#allocation5 + $0x50] sm:$0xff] %vm1520_vm4, %v1514_v49  ;;  %2196 = vlog2.f32 (!%p1834_p11), %v1574_v44  ;;  %v1559_v49 = vld [vmem:[#allocation4 + $0x10] sm:$0xff] (!%p1834_p11)  ;;  %v1566_v62 = vld [vmem:[#allocation4 + $0x48] sm:$0xff] (!%p1834_p11) }
 0x503   : > { %v1483_v4 = vpop.xlane.xlu1 %1482 }
 0x504   : > { %v1509_v9 = vadd.f32 %v1483_v4, %v1461_v39  ;;  %v1576_v16 = vld [vmem:[#allocation5 + $0x18] sm:$0xff] (!%p1834_p11)  ;;  %v1638_v39 = vld [vmem:[#allocation3 + $0x8] sm:$0xff] (!%p1834_p11) }
 0x505   : > { %v1575_v19 = vld [vmem:[#allocation5 + $0x10] sm:$0xff] (!%p1834_p11)  ;;  %v1560_v4 = vld [vmem:[#allocation4 + $0x18] sm:$0xff] (!%p1834_p11) }
 0x506   : > { %1526 = vst.msk [vmem:[#allocation5 + $0x28] sm:$0xff] %vm1520_vm4, %v1509_v9  ;;  %2198 = vlog2.f32 (!%p1834_p11), %v1575_v19 }
 0x507   : > { %v1499_v40 = vpop.xlane.xlu1 %1498  ;;  %v1481_v7 = vpop.xlane.xlu0 %1480  ;;  %2200 = vlog2.f32 (!%p1834_p11), %v1576_v16 }
 0x508   : > { %v1517_v17 = vadd.f32 %v1499_v40, %v1469_v54  ;;  %v1508_v8 = vadd.f32 %v1481_v7, %v1460_v1  ;;  %v1584_v51 = vld [vmem:[#allocation5 + $0x58] sm:$0xff] (!%p1834_p11)  ;;  %v1561_v54 = vld [vmem:[#allocation4 + $0x20] sm:$0xff] (!%p1834_p11) }
 0x509   : > { %v1583_v63 = vld [vmem:[#allocation5 + $0x50] sm:$0xff] (!%p1834_p11) }
 0x50a   : > { %1534 = vst.msk [vmem:[#allocation5 + $0x68] sm:$0xff] %vm1520_vm4, %v1517_v17  ;;  %1525 = vst.msk [vmem:[#allocation5 + $0x20] sm:$0xff] %vm1520_vm4, %v1508_v8  ;;  %v1562_v8 = vld [vmem:[#allocation4 + $0x28] sm:$0xff] (!%p1834_p11) }
 0x50b   : > { %v1497_v5 = vpop.xlane.xlu0 %1496  ;;  %v2195_v38 = vpop.eup (!%p1834_p11), %2194 }
 0x50c   : > { %v1516_v48 = vadd.f32 %v1497_v5, %v1468_v14  ;;  %v2197_v22 = vpop.eup (!%p1834_p11), %2196  ;;  %v1590_v53 = vmul.f32 (!%p1834_p11), 0.6931472, %v2195_v38 }
 0x50d   : > { %v1578_v43 = vld [vmem:[#allocation5 + $0x28] sm:$0xff] (!%p1834_p11)  ;;  %v1592_v61 = vmul.f32 (!%p1834_p11), 0.6931472, %v2197_v22 }
 0x50e   : > { %1533 = vst.msk [vmem:[#allocation5 + $0x60] sm:$0xff] %vm1520_vm4, %v1516_v48  ;;  %v1621_v30 = vadd.f32 (!%p1834_p11), %v1590_v53, %v1557_v6  ;;  %v1568_v6 = vld [vmem:[#allocation4 + $0x58] sm:$0xff] (!%p1834_p11) }
 0x50f   : > { %v1487_v42 = vpop.xlane.xlu1 %1486  ;;  %v1622_v9 = vadd.f32 (!%p1834_p11), %v1592_v61, %v1558_v20  ;;  %v1647_v20 = vld [vmem:[#allocation3 + $0x50] sm:$0xff] (!%p1834_p11) }
 0x510   : > { %v1511_v18 = vadd.f32 %v1487_v42, %v1463_v59  ;;  %v2199_v2 = vpop.eup (!%p1834_p11), %2198  ;;  %v1653_v40 = vsub.f32 (!%p1834_p11), %v1621_v30, %v1637_v45  ;;  %v1570_v30 = vld [vmem:[#allocation4 + $0x68] sm:$0xff] (!%p1834_p11) }
 0x511   : > { %v1577_v57 = vld [vmem:[#allocation5 + $0x20] sm:$0xff] (!%p1834_p11)  ;;  %v1586_v12 = vld [vmem:[#allocation5 + $0x68] sm:$0xff] (!%p1834_p11)  ;;  %v2201_v27 = vpop.eup (!%p1834_p11), %2200  ;;  %v1594_v0 = vmul.f32 (!%p1834_p11), 0.6931472, %v2199_v2  ;;  %v1654_v56 = vsub.f32 (!%p1834_p11), %v1622_v9, %v1638_v39  ;;  %v1571_v9 = vld [vmem:[#allocation4 + $0x70] sm:$0xff] (!%p1834_p11) }
 0x512   : > { %1528 = vst.msk [vmem:[#allocation5 + $0x38] sm:$0xff] %vm1520_vm4, %v1511_v18  ;;  %2202 = vlog2.f32 (!%p1834_p11), %v1577_v57  ;;  %v1596_v24 = vmul.f32 (!%p1834_p11), 0.6931472, %v2201_v27  ;;  %1669 = vst.msk [vmem:[%s2339_s7] sm:$0xff] (!%p1834_p11), %vm1520_vm4, %v1653_v40  ;;  %v1564_v18 = vld [vmem:[#allocation4 + $0x38] sm:$0xff] (!%p1834_p11)  ;;  %v1645_v57 = vld [vmem:[#allocation3 + $0x40] sm:$0xff] (!%p1834_p11) }
 0x513   : > { %v1503_v10 = vpop.xlane.xlu1 %1502  ;;  %v1485_v13 = vpop.xlane.xlu0 %1484  ;;  %2204 = vlog2.f32 (!%p1834_p11), %v1578_v43  ;;  %v1623_v7 = vadd.f32 (!%p1834_p11), %v1594_v0, %v1559_v49  ;;  %1670 = vst.msk [vmem:[%s2339_s7 + $0x8] sm:$0xff] (!%p1834_p11), %vm1520_vm4, %v1654_v56  ;;  %v1569_v2 = vld [vmem:[#allocation4 + $0x60] sm:$0xff] (!%p1834_p11)  ;;  %v1572_v40 = vld [vmem:[#allocation4 + $0x78] sm:$0xff] (!%p1834_p11) }
 0x514   : > { %v1519_v28 = vadd.f32 %v1503_v10, %v1471_v15  ;;  %v1510_v58 = vadd.f32 %v1485_v13, %v1462_v25  ;;  %1556 = sbr.rel (%p1834_p11) target bundleno = 1337 (0x539), region = 40  ;;  %v1624_v5 = vadd.f32 (!%p1834_p11), %v1596_v24, %v1560_v4  ;;  %v1643_v10 = vld [vmem:[#allocation3 + $0x30] sm:$0xff] (!%p1834_p11) }
 0x515   : > { %v1585_v23 = vld [vmem:[#allocation5 + $0x60] sm:$0xff] (!%p1834_p11)  ;;  %v1655_v46 = vsub.f32 (!%p1834_p11), %v1623_v7, %v1639_v41 }
 0x516   : > { %1536 = vst.msk [vmem:[#allocation5 + $0x78] sm:$0xff] %vm1520_vm4, %v1519_v28  ;;  %1527 = vst.msk [vmem:[#allocation5 + $0x30] sm:$0xff] %vm1520_vm4, %v1510_v58  ;;  %v1656_v25 = vsub.f32 (!%p1834_p11), %v1624_v5, %v1640_v52  ;;  %v1652_v5 = vld [vmem:[#allocation3 + $0x78] sm:$0xff] (!%p1834_p11) }
 0x517   : > { %v1501_v31 = vpop.xlane.xlu0 %1500  ;;  %1671 = vst.msk [vmem:[%s2339_s7 + $0x10] sm:$0xff] (!%p1834_p11), %vm1520_vm4, %v1655_v46 }
 0x518   : > { %v1518_v35 = vadd.f32 %v1501_v31, %v1470_v55  ;;  %v1644_v31 = vld [vmem:[#allocation3 + $0x38] sm:$0xff] (!%p1834_p11)  ;;  %1672 = vst.msk [vmem:[%s2339_s7 + $0x18] sm:$0xff] (!%p1834_p11), %vm1520_vm4, %v1656_v25 }
 0x519   : > { %v1580_v47 = vld [vmem:[#allocation5 + $0x38] sm:$0xff] (!%p1834_p11) }
 0x51a   : > { %1535 = vst.msk [vmem:[#allocation5 + $0x70] sm:$0xff] %vm1520_vm4, %v1518_v35 }
 0x51c   : > { %v2203_v29 = vpop.eup %2202 }
 0x51d   : > { %v1579_v3 = vld [vmem:[#allocation5 + $0x30] sm:$0xff]  ;;  %v1588_v1 = vld [vmem:[#allocation5 + $0x78] sm:$0xff]  ;;  %v2205_v11 = vpop.eup %2204  ;;  %v1598_v17 = vmul.f32 0.6931472, %v2203_v29 }
 0x51e   : > { %2206 = vlog2.f32 %v1579_v3  ;;  %v1600_v48 = vmul.f32 0.6931472, %v2205_v11  ;;  %v1567_v3 = vld [vmem:[#allocation4 + $0x50] sm:$0xff] }
 0x51f   : > { %2208 = vlog2.f32 %v1580_v47  ;;  %v1625_v42 = vadd.f32 %v1598_v17, %v1561_v54  ;;  %v1651_v17 = vld [vmem:[#allocation3 + $0x70] sm:$0xff] }
 0x520   : > { %2210 = vlog2.f32 %v1581_v33  ;;  %v1626_v37 = vadd.f32 %v1600_v48, %v1562_v8 }
 0x521   : > { %2212 = vlog2.f32 %v1582_v21  ;;  %v1587_v50 = vld [vmem:[#allocation5 + $0x70] sm:$0xff]  ;;  %v1657_v58 = vsub.f32 %v1625_v42, %v1641_v36 }
 0x522   : > { %2214 = vlog2.f32 %v1583_v63  ;;  %v1658_v19 = vsub.f32 %v1626_v37, %v1642_v34  ;;  %v1646_v63 = vld [vmem:[#allocation3 + $0x48] sm:$0xff] }
 0x523   : > { %2216 = vlog2.f32 %v1584_v51  ;;  %1673 = vst.msk [vmem:[%s2339_s7 + $0x20] sm:$0xff] %vm1520_vm4, %v1657_v58 }
 0x524   : > { %2218 = vlog2.f32 %v1585_v23  ;;  %1674 = vst.msk [vmem:[%s2339_s7 + $0x28] sm:$0xff] %vm1520_vm4, %v1658_v19 }
 0x525   : > { %2220 = vlog2.f32 %v1586_v12  ;;  %v1648_v12 = vld [vmem:[#allocation3 + $0x58] sm:$0xff] }
 0x526   : > { %2222 = vlog2.f32 %v1587_v50  ;;  %v1649_v50 = vld [vmem:[#allocation3 + $0x60] sm:$0xff] }
 0x527   : > { %2224 = vlog2.f32 %v1588_v1  ;;  %v1650_v1 = vld [vmem:[#allocation3 + $0x68] sm:$0xff] }
 0x528   : > { %v2207_v14 = vpop.eup %2206 }
 0x529   : > { %v2209_v59 = vpop.eup %2208  ;;  %v1602_v32 = vmul.f32 0.6931472, %v2207_v14 }
 0x52a   : > { %v2211_v15 = vpop.eup %2210  ;;  %v1604_v13 = vmul.f32 0.6931472, %v2209_v59 }
 0x52b   : > { %v2213_v28 = vpop.eup %2212  ;;  %v1627_v55 = vadd.f32 %v1602_v32, %v1563_v26  ;;  %v1606_v35 = vmul.f32 0.6931472, %v2211_v15 }
 0x52c   : > { %v2215_v44 = vpop.eup %2214  ;;  %v1628_v16 = vadd.f32 %v1604_v13, %v1564_v18  ;;  %v1608_v43 = vmul.f32 0.6931472, %v2213_v28 }
 0x52d   : > { %v2217_v47 = vpop.eup %2216  ;;  %v1659_v33 = vsub.f32 %v1627_v55, %v1643_v10  ;;  %v1629_v21 = vadd.f32 %v1606_v35, %v1565_v60  ;;  %v1610_v38 = vmul.f32 0.6931472, %v2215_v44 }
 0x52e   : > { %v2219_v51 = vpop.eup %2218  ;;  %v1660_v22 = vsub.f32 %v1628_v16, %v1644_v31  ;;  %v1630_v53 = vadd.f32 %v1608_v43, %v1566_v62  ;;  %v1612_v23 = vmul.f32 0.6931472, %v2217_v47 }
 0x52f   : > { %v2221_v45 = vpop.eup %2220  ;;  %1675 = vst.msk [vmem:[%s2339_s7 + $0x30] sm:$0xff] %vm1520_vm4, %v1659_v33  ;;  %v1661_v61 = vsub.f32 %v1629_v21, %v1645_v57  ;;  %v1631_v49 = vadd.f32 %v1610_v38, %v1567_v3  ;;  %v1614_v27 = vmul.f32 0.6931472, %v2219_v51 }
 0x530   : > { %v2223_v39 = vpop.eup %2222  ;;  %1676 = vst.msk [vmem:[%s2339_s7 + $0x38] sm:$0xff] %vm1520_vm4, %v1660_v22  ;;  %v1662_v0 = vsub.f32 %v1630_v53, %v1646_v63  ;;  %v1632_v4 = vadd.f32 %v1612_v23, %v1568_v6  ;;  %v1616_v29 = vmul.f32 0.6931472, %v2221_v45 }
 0x531   : > { %v2225_v41 = vpop.eup %2224  ;;  %1677 = vst.msk [vmem:[%s2339_s7 + $0x40] sm:$0xff] %vm1520_vm4, %v1661_v61  ;;  %v1663_v24 = vsub.f32 %v1631_v49, %v1647_v20  ;;  %v1633_v54 = vadd.f32 %v1614_v27, %v1569_v2  ;;  %v1618_v11 = vmul.f32 0.6931472, %v2223_v39 }
 0x532   : > { %1678 = vst.msk [vmem:[%s2339_s7 + $0x48] sm:$0xff] %vm1520_vm4, %v1662_v0  ;;  %v1664_v7 = vsub.f32 %v1632_v4, %v1648_v12  ;;  %v1634_v52 = vadd.f32 %v1616_v29, %v1570_v30  ;;  %v1620_v8 = vmul.f32 0.6931472, %v2225_v41 }
 0x533   : > { %1679 = vst.msk [vmem:[%s2339_s7 + $0x50] sm:$0xff] %vm1520_vm4, %v1663_v24  ;;  %v1665_v14 = vsub.f32 %v1633_v54, %v1649_v50  ;;  %v1635_v56 = vadd.f32 %v1618_v11, %v1571_v9 }
 0x534   : > { %1680 = vst.msk [vmem:[%s2339_s7 + $0x58] sm:$0xff] %vm1520_vm4, %v1664_v7  ;;  %v1666_v36 = vsub.f32 %v1634_v52, %v1650_v1  ;;  %v1636_v48 = vadd.f32 %v1620_v8, %v1572_v40 }
 0x535   : > { %1681 = vst.msk [vmem:[%s2339_s7 + $0x60] sm:$0xff] %vm1520_vm4, %v1665_v14  ;;  %v1667_v26 = vsub.f32 %v1635_v56, %v1651_v17 }
 0x536   : > { %1682 = vst.msk [vmem:[%s2339_s7 + $0x68] sm:$0xff] %vm1520_vm4, %v1666_v36  ;;  %v1668_v59 = vsub.f32 %v1636_v48, %v1652_v5 }
 0x537   : > { %1683 = vst.msk [vmem:[%s2339_s7 + $0x70] sm:$0xff] %vm1520_vm4, %v1667_v26 }
 0x538   : > { %1684 = vst.msk [vmem:[%s2339_s7 + $0x78] sm:$0xff] %vm1520_vm4, %v1668_v59 }
 0x539 PF: > { %s13_s16 = sadd.s32 1, %s2264_s16   ;;  %s3325_s12 = smov %s2256_s14 }
 0x53a   : > { %p10_p12 = scmp.ge.s32.totalorder %s13_s16, 6   ;;  %s3326_s13 = smov %s2260_s15 }
 0x53b   : > { %s3327_s14 = smov %s3330_s17  ;;  %s3328_s15 = smov %s3334_s18 }
 0x53c   :  { %12 = sbr.rel (!%p10_p12) target bundleno = 3 (0x3), region = 76 }

</bundles_post_ra>
